<compile_context>
chip_gen: v7x
topology: tpu7x:2x2x1
jax: 0.10.0
libtpu: 0.0.40
codegen_flags: <defaults>
</compile_context>

<pallas_src>
import functools

import jax
import jax.numpy as jnp
import numpy as np
from jax.experimental import pallas as pl
from jax.experimental.pallas import tpu as pltpu


# ----------------------------------------------------------------------------
# Kernel
# ----------------------------------------------------------------------------
def _bottleneck_kernel(x_ref, catf_ref, cblk_ref, sblk_ref, b_ref, *rest,
                       do_invert, compute_dtype):
    """One grid step == TB batch elements presented as an (M, H) slab.

    x_ref    : (M, H)   M = TB*S rows of hidden states
    catf_ref : (H, 2H)  [Ch @ W.T | Sh @ W.T]  (forward H-side DFT + Linear folded)
    cblk_ref : (M, M)   kron(I_TB, Cs)         (S-side cos, block-diagonal)
    sblk_ref : (M, M)   kron(I_TB, Ss)         (S-side sin, block-diagonal)
    b_ref    : (1, H)   Linear bias (f32)
    rest     : (cati_ref?, o_ref) — cati only present when do_invert
               cati_ref : (H, 2H)  [Ch | Sh] / (S*H)   (inverse DFT, scale folded)
    """
    if do_invert:
        cati_ref, o_ref = rest
    else:
        (o_ref,) = rest

    H = catf_ref.shape[0]
    x = x_ref[...].astype(compute_dtype)          # `.float()` then compute dtype

    # --- stage 1: H-side DFT (cos|sin, W folded in) as a single GEMM ---------
    u = jnp.dot(x, catf_ref[...], preferred_element_type=jnp.float32)   # (M, 2H)
    # --- stage 1: S-side DFT, block-diagonal over the TB batch rows, + bias --
    # (slices at a 128-lane boundary are free static views for H % 128 == 0)
    y = (jnp.dot(cblk_ref[...], u[:, :H].astype(compute_dtype),
                 preferred_element_type=jnp.float32)
         - jnp.dot(sblk_ref[...], u[:, H:].astype(compute_dtype),
                   preferred_element_type=jnp.float32)
         + b_ref[...])                                                   # (M, H) f32

    if do_invert:
        # --- stage 2: inverse DFT; 1/(S*H) already folded into cati ----------
        v = jnp.dot(y.astype(compute_dtype), cati_ref[...],
                    preferred_element_type=jnp.float32)                  # (M, 2H)
        y = (jnp.dot(cblk_ref[...], v[:, :H].astype(compute_dtype),
                     preferred_element_type=jnp.float32)
             - jnp.dot(sblk_ref[...], v[:, H:].astype(compute_dtype),
                       preferred_element_type=jnp.float32))

    o_ref[...] = y.astype(o_ref.dtype)


# ----------------------------------------------------------------------------
# Host-side helpers (memoized constants, generation-aware parameters)
# ----------------------------------------------------------------------------
def _dft_matrices_np(n):
    k = np.arange(n)
    ang = 2.0 * np.pi * np.outer(k, k) / n
    return np.cos(ang), np.sin(ang)


@functools.lru_cache(maxsize=None)
def _cached_constants(S, H, TB, dtype_name, want_inverse):
    """Grid-invariant DFT tables, built once per (S, H, TB, dtype) and reused
    across calls; only the per-call Ch@W.T fold depends on the weight."""
    cdt = jnp.dtype(dtype_name)
    cs, ss = _dft_matrices_np(S)
    ch, sh = _dft_matrices_np(H)
    eye = np.eye(TB, dtype=np.float32)
    cblk = jnp.asarray(np.kron(eye, cs).astype(np.float32)).astype(cdt)  # (M, M)
    sblk = jnp.asarray(np.kron(eye, ss).astype(np.float32)).astype(cdt)  # (M, M)
    ch32 = jnp.asarray(ch.astype(np.float32))
    sh32 = jnp.asarray(sh.astype(np.float32))
    cati = None
    if want_inverse:
        inv = 1.0 / (S * H)               # ifft normalization folded in here
        cati = jnp.asarray(
            np.concatenate([ch * inv, sh * inv], axis=1).astype(np.float32)
        ).astype(cdt)                                                    # (H, 2H)
    return ch32, sh32, cblk, sblk, cati


@functools.lru_cache(maxsize=1)
def _tpu_params():
    """(target MXU M-rows, VMEM capacity bytes, x-input buffer depth)."""
    target_rows, x_buffers = 256, 3          # v6e / v7x: 256-wide MXU
    try:
        kind = jax.devices()[0].device_kind.lower()
    except Exception:
        kind = ""
    if "v5e" in kind or "v5 lite" in kind or "v5lite" in kind:
        target_rows, x_buffers = 128, 2      # v5e: 128-wide MXU, compute-bound
    try:
        vmem_cap = int(pltpu.get_tpu_info().vmem_capacity_bytes)
    except Exception:
        vmem_cap = 64 * 1024 * 1024          # conservative (v7x per-TC) fallback
    return target_rows, vmem_cap, x_buffers


def _pick_batch_tile(B, S, target_rows):
    """Smallest TB (proper divisor of B) with TB*S >= target_rows and TB*S a
    multiple of 8; prefers TB < B so the parallel grid has >= 2 steps (keeps
    both v7x TensorCores busy). Falls back to TB = B (full-extent block)."""
    if B == 1:
        return 1
    best = None
    for tb in range(1, B):
        if B % tb != 0:
            continue
        if (tb * S) % 8 != 0:
            continue
        best = tb
        if tb * S >= target_rows:
            break
    return B if best is None else best


# ----------------------------------------------------------------------------
# Wrappers
# ----------------------------------------------------------------------------
def adapter_forward(hidden_states, *args, **kwargs):
    """AdapterWithFourierTransform.forward is the identity — no kernel, no
    HBM round-trip."""
    return hidden_states


def adapter_bottleneck_forward(x, w, bias, *, do_invert=True,
                               compute_dtype=jnp.bfloat16,
                               out_dtype=jnp.float32):
    """AdapterWithFourierTransform.bottleneck_layer_forward as one Pallas kernel.

    x    : (B, S, H) hidden states
    w    : (H, H)    weight of the original nn.Linear layer
    bias : (H,)      bias of the original nn.Linear layer
    """
    B, S, H = x.shape
    target_rows, vmem_cap, x_buffers = _tpu_params()
    TB = _pick_batch_tile(B, S, target_rows)
    M = TB * S
    steps = B // TB
    x_buffers = max(1, min(x_buffers, steps))

    cdt_name = jnp.dtype(compute_dtype).name
    ch32, sh32, cblk, sblk, cati = _cached_constants(S, H, TB, cdt_name,
                                                     bool(do_invert))

    # Per-call fold of the Linear weight into the forward H-side DFT table.
    # HIGHEST precision only on the f32-fidelity path (the table is cast to
    # bf16 anyway on the fast path).
    w32 = jnp.asarray(w, jnp.float32)
    prec = (jax.lax.Precision.HIGHEST
            if jnp.dtype(compute_dtype) == jnp.dtype(jnp.float32) else None)
    catf = jnp.concatenate(
        [jnp.dot(ch32, w32.T, precision=prec),
         jnp.dot(sh32, w32.T, precision=prec)], axis=1).astype(compute_dtype)
    bias2d = jnp.asarray(bias, jnp.float32).reshape(1, H)

    x2d = x.reshape(B * S, H)   # lane-dense (rows, H) slab; free row-major collapse

    def const_spec(shape):      # grid-invariant -> single VMEM buffer
        nd = len(shape)
        return pl.BlockSpec(shape, lambda i: (0,) * nd,
                            pipeline_mode=pl.Buffered(1))

    in_specs = [
        pl.BlockSpec((M, H), lambda i: (i, 0),
                     pipeline_mode=pl.Buffered(x_buffers)),   # x slab (varying)
        const_spec((H, 2 * H)),                               # [Ch@W.T | Sh@W.T]
        const_spec((M, M)),                                   # kron(I_TB, Cs)
        const_spec((M, M)),                                   # kron(I_TB, Ss)
        const_spec((1, H)),                                   # bias
    ]
    inputs = [x2d, catf, cblk, sblk, bias2d]
    if do_invert:
        in_specs.append(const_spec((H, 2 * H)))               # [Ch | Sh]/(S*H)
        inputs.append(cati)

    kernel = functools.partial(_bottleneck_kernel, do_invert=bool(do_invert),
                               compute_dtype=compute_dtype)

    # Advisory cost hint + VMEM accounting.
    cbytes = jnp.dtype(compute_dtype).itemsize
    obytes = jnp.dtype(out_dtype).itemsize
    stages = 2 if do_invert else 1
    flops = steps * stages * (2 * M * H * (2 * H) + 2 * (2 * M * M * H))
    const_bytes = ((catf.size + cblk.size + sblk.size) * cbytes
                   + (cati.size * cbytes if do_invert else 0) + H * 4)
    bytes_accessed = (x2d.size * x2d.dtype.itemsize + B * S * H * obytes
                      + const_bytes)

    # Single-buffered constants + multi-buffered x / double-buffered out
    # + rough f32 working set (u/v, y).
    work_bytes = stages * (M * 2 * H) * 4 + 2 * M * H * 4
    vmem_need = (const_bytes
                 + x_buffers * M * H * x2d.dtype.itemsize
                 + 2 * M * H * obytes
                 + work_bytes)
    # Generation-aware scoped-VMEM cap (v7x: 64 MiB/TC; v5e/v6e: 128 MiB).
    vmem_limit = int(min(max(vmem_need + (8 << 20), 32 << 20),
                         vmem_cap - (4 << 20)))

    out2d = pl.pallas_call(
        kernel,
        out_shape=jax.ShapeDtypeStruct((B * S, H), out_dtype),
        grid_spec=pltpu.PrefetchScalarGridSpec(
            num_scalar_prefetch=0,
            grid=(steps,),
            in_specs=in_specs,
            out_specs=pl.BlockSpec((M, H), lambda i: (i, 0)),
        ),
        compiler_params=pltpu.CompilerParams(
            dimension_semantics=("parallel",),
            vmem_limit_bytes=vmem_limit),
        cost_estimate=pl.CostEstimate(flops=int(flops), transcendentals=0,
                                      bytes_accessed=int(bytes_accessed)),
    )(*inputs)

    # TODO(synk): for H large enough that the single-buffered (H,2H) DFT tables
    # exceed ~1/4 of VMEM (H >= ~2048 on v7x's 64 MiB), add an 'arbitrary'
    # column-chunk grid axis over catf/cati with an f32 VMEM accumulator
    # instead of keeping the tables fully resident.
    return out2d.reshape(B, S, H)


# ----------------------------------------------------------------------------
# Pure-JAX reference (ground truth)
# ----------------------------------------------------------------------------
def _ref_bottleneck(x, w, bias, do_invert=True):
    f = jnp.real(jnp.fft.fft(jnp.fft.fft(x.astype(jnp.float32), axis=-1), axis=-2))
    y = f @ w.T + bias
    if do_invert:
        y = jnp.real(jnp.fft.ifft(jnp.fft.ifft(y, axis=-1), axis=-2))
    return y.astype(jnp.float32)


def _check(got, want, rel):
    got = np.asarray(got)
    want = np.asarray(want)
    scale = float(np.max(np.abs(want))) + 1e-6
    np.testing.assert_allclose(got, want, rtol=rel, atol=rel * scale)


# ----------------------------------------------------------------------------
if __name__ == "__main__":
    # hidden_states: (batch, seq, hidden) — small shapes; TB=32 -> M=256 slab
    # on v6e/v7x (TB=16 -> M=128 on v5e), >= 2 parallel grid steps.
    B, S, H = 64, 8, 128

    key = jax.random.PRNGKey(0)
    kx, kw, kb = jax.random.split(key, 3)
    x = jax.random.normal(kx, (B, S, H), dtype=jnp.float32)
    # Deterministic synthetic parameters for `original_layer` = nn.Linear(H, H).
    w = jax.random.normal(kw, (H, H), dtype=jnp.float32) * (1.0 / np.sqrt(H))
    bias = jax.random.normal(kb, (H,), dtype=jnp.float32) * 0.01

    # 1) forward(): identity (no kernel, no copy).
    np.testing.assert_allclose(np.asarray(adapter_forward(x)), np.asarray(x),
                               rtol=0, atol=0)

    # 2) bottleneck_layer_forward(): FFT.real -> Linear -> IFFT.real.
    y_ref = jax.block_until_ready(_ref_bottleneck(x, w, bias, do_invert=True))

    # Default fast path: bf16 constants/inputs, f32 accumulation, f32 output.
    y_bf16 = jax.block_until_ready(
        adapter_bottleneck_forward(x, w, bias, do_invert=True))
    _check(y_bf16, y_ref, rel=5e-2)

    # f32 path (closest to torch `.float()` numerics; keep for fidelity / large H).
    y_f32 = jax.block_until_ready(
        adapter_bottleneck_forward(x, w, bias, do_invert=True,
                                   compute_dtype=jnp.float32))
    _check(y_f32, y_ref, rel=1e-2)

    # bf16-output path (halves output HBM traffic when downstream accepts it).
    y_bf16_out = jax.block_until_ready(
        adapter_bottleneck_forward(x, w, bias, do_invert=True,
                                   out_dtype=jnp.bfloat16))
    _check(np.asarray(y_bf16_out.astype(jnp.float32)), y_ref, rel=5e-2)

    # do_invert=False branch (FFT.real -> Linear only; cati is not passed/DMA'd).
    y_ni = jax.block_until_ready(
        adapter_bottleneck_forward(x, w, bias, do_invert=False))
    y_ni_ref = jax.block_until_ready(_ref_bottleneck(x, w, bias, do_invert=False))
    _check(y_ni, y_ni_ref, rel=5e-2)

    # TODO(synk): the torch original_layer / InverseFourierTransformLayer pass
    # hidden states around as 1-tuples; that tuple wrapping is Python glue and
    # is not reproduced here.
    print("KERNEL_OK")
</pallas_src>

<mosaic_0001>
module attributes {stable_mosaic.version = 11 : i64} {
  func.func @_bottleneck_kernel(%arg0: i32, %arg1: memref<256x128xf32, #tpu.memory_space<vmem>>, %arg2: memref<128x256xbf16, #tpu.memory_space<vmem>>, %arg3: memref<256x256xbf16, #tpu.memory_space<vmem>>, %arg4: memref<256x256xbf16, #tpu.memory_space<vmem>>, %arg5: memref<1x128xf32, #tpu.memory_space<vmem>>, %arg6: memref<128x256xbf16, #tpu.memory_space<vmem>>, %arg7: memref<256x128xf32, #tpu.memory_space<vmem>>) attributes {dimension_semantics = [#tpu.dimension_semantics<parallel>], iteration_bounds = array<i64: 2>, scalar_prefetch = 0 : i64, scratch_operands = 0 : i64, tpu.core_type = #tpu.core_type<tc>, window_params = [{pipeline_mode = #tpu.pipeline_mode<double_buffered>, transform_indices = @transform_0, window_bounds = array<i64: 256, 128>}, {pipeline_mode = #tpu.pipeline_mode<synchronous>, transform_indices = @transform_1, window_bounds = array<i64: 128, 256>}, {pipeline_mode = #tpu.pipeline_mode<synchronous>, transform_indices = @transform_2, window_bounds = array<i64: 256, 256>}, {pipeline_mode = #tpu.pipeline_mode<synchronous>, transform_indices = @transform_3, window_bounds = array<i64: 256, 256>}, {pipeline_mode = #tpu.pipeline_mode<synchronous>, transform_indices = @transform_4, window_bounds = array<i64: 1, 128>}, {pipeline_mode = #tpu.pipeline_mode<synchronous>, transform_indices = @transform_5, window_bounds = array<i64: 128, 256>}, {transform_indices = @transform_6, window_bounds = array<i64: 256, 128>}]} {
    %c0 = arith.constant 0 : index
    %c0_0 = arith.constant 0 : index
    %0 = vector.load %arg1[%c0, %c0_0] : memref<256x128xf32, #tpu.memory_space<vmem>>, vector<256x128xf32>
    %1 = arith.truncf %0 : vector<256x128xf32> to vector<256x128xbf16>
    %c0_1 = arith.constant 0 : index
    %c0_2 = arith.constant 0 : index
    %2 = vector.load %arg2[%c0_1, %c0_2] : memref<128x256xbf16, #tpu.memory_space<vmem>>, vector<128x256xbf16>
    %cst = arith.constant dense<0.000000e+00> : vector<256x256xf32>
    %3 = tpu.matmul %1, %2, %cst {dimension_numbers = #tpu.dot_dimension_numbers<[1], [0], [0], [1], [0, 0, 1, 1], [], []>} : vector<256x128xbf16>, vector<128x256xbf16>, vector<256x256xf32> -> vector<256x256xf32>
    %c0_3 = arith.constant 0 : index
    %c0_4 = arith.constant 0 : index
    %4 = vector.load %arg3[%c0_3, %c0_4] : memref<256x256xbf16, #tpu.memory_space<vmem>>, vector<256x256xbf16>
    %5 = vector.extract_strided_slice %3 {offsets = [0, 0], sizes = [256, 128], strides = [1, 1]} : vector<256x256xf32> to vector<256x128xf32>
    %6 = arith.truncf %5 : vector<256x128xf32> to vector<256x128xbf16>
    %cst_5 = arith.constant dense<0.000000e+00> : vector<256x128xf32>
    %7 = tpu.matmul %4, %6, %cst_5 {dimension_numbers = #tpu.dot_dimension_numbers<[1], [0], [0], [1], [0, 0, 1, 1], [], []>} : vector<256x256xbf16>, vector<256x128xbf16>, vector<256x128xf32> -> vector<256x128xf32>
    %c0_6 = arith.constant 0 : index
    %c0_7 = arith.constant 0 : index
    %8 = vector.load %arg4[%c0_6, %c0_7] : memref<256x256xbf16, #tpu.memory_space<vmem>>, vector<256x256xbf16>
    %9 = vector.extract_strided_slice %3 {offsets = [0, 128], sizes = [256, 128], strides = [1, 1]} : vector<256x256xf32> to vector<256x128xf32>
    %10 = arith.truncf %9 : vector<256x128xf32> to vector<256x128xbf16>
    %cst_8 = arith.constant dense<0.000000e+00> : vector<256x128xf32>
    %11 = tpu.matmul %8, %10, %cst_8 {dimension_numbers = #tpu.dot_dimension_numbers<[1], [0], [0], [1], [0, 0, 1, 1], [], []>} : vector<256x256xbf16>, vector<256x128xbf16>, vector<256x128xf32> -> vector<256x128xf32>
    %12 = arith.subf %7, %11 : vector<256x128xf32>
    %c0_9 = arith.constant 0 : index
    %c0_10 = arith.constant 0 : index
    %13 = vector.load %arg5[%c0_9, %c0_10] : memref<1x128xf32, #tpu.memory_space<vmem>>, vector<1x128xf32>
    %14 = vector.broadcast %13 : vector<1x128xf32> to vector<256x128xf32>
    %15 = arith.addf %12, %14 : vector<256x128xf32>
    %16 = arith.truncf %15 : vector<256x128xf32> to vector<256x128xbf16>
    %c0_11 = arith.constant 0 : index
    %c0_12 = arith.constant 0 : index
    %17 = vector.load %arg6[%c0_11, %c0_12] : memref<128x256xbf16, #tpu.memory_space<vmem>>, vector<128x256xbf16>
    %cst_13 = arith.constant dense<0.000000e+00> : vector<256x256xf32>
    %18 = tpu.matmul %16, %17, %cst_13 {dimension_numbers = #tpu.dot_dimension_numbers<[1], [0], [0], [1], [0, 0, 1, 1], [], []>} : vector<256x128xbf16>, vector<128x256xbf16>, vector<256x256xf32> -> vector<256x256xf32>
    %c0_14 = arith.constant 0 : index
    %c0_15 = arith.constant 0 : index
    %19 = vector.load %arg3[%c0_14, %c0_15] : memref<256x256xbf16, #tpu.memory_space<vmem>>, vector<256x256xbf16>
    %20 = vector.extract_strided_slice %18 {offsets = [0, 0], sizes = [256, 128], strides = [1, 1]} : vector<256x256xf32> to vector<256x128xf32>
    %21 = arith.truncf %20 : vector<256x128xf32> to vector<256x128xbf16>
    %cst_16 = arith.constant dense<0.000000e+00> : vector<256x128xf32>
    %22 = tpu.matmul %19, %21, %cst_16 {dimension_numbers = #tpu.dot_dimension_numbers<[1], [0], [0], [1], [0, 0, 1, 1], [], []>} : vector<256x256xbf16>, vector<256x128xbf16>, vector<256x128xf32> -> vector<256x128xf32>
    %c0_17 = arith.constant 0 : index
    %c0_18 = arith.constant 0 : index
    %23 = vector.load %arg4[%c0_17, %c0_18] : memref<256x256xbf16, #tpu.memory_space<vmem>>, vector<256x256xbf16>
    %24 = vector.extract_strided_slice %18 {offsets = [0, 128], sizes = [256, 128], strides = [1, 1]} : vector<256x256xf32> to vector<256x128xf32>
    %25 = arith.truncf %24 : vector<256x128xf32> to vector<256x128xbf16>
    %cst_19 = arith.constant dense<0.000000e+00> : vector<256x128xf32>
    %26 = tpu.matmul %23, %25, %cst_19 {dimension_numbers = #tpu.dot_dimension_numbers<[1], [0], [0], [1], [0, 0, 1, 1], [], []>} : vector<256x256xbf16>, vector<256x128xbf16>, vector<256x128xf32> -> vector<256x128xf32>
    %27 = arith.subf %22, %26 : vector<256x128xf32>
    %c0_20 = arith.constant 0 : index
    %c0_21 = arith.constant 0 : index
    %28 = vector.load %arg7[%c0_20, %c0_21] : memref<256x128xf32, #tpu.memory_space<vmem>>, vector<256x128xf32>
    tpu.vector_store %arg7[%c0_20, %c0_21], %27 {strides = array<i32>} : memref<256x128xf32, #tpu.memory_space<vmem>>, vector<256x128xf32>,
    return
  }
  func.func @transform_0(%arg0: i32) -> (i32, i32) {
    %c0_i32 = arith.constant 0 : i32
    %c0_i32_0 = arith.constant 0 : i32
    return %arg0, %c0_i32 : i32, i32
  }
  func.func @transform_1(%arg0: i32) -> (i32, i32) {
    %c0_i32 = arith.constant 0 : i32
    %c0_i32_0 = arith.constant 0 : i32
    %c0_i32_1 = arith.constant 0 : i32
    return %c0_i32, %c0_i32_0 : i32, i32
  }
  func.func @transform_2(%arg0: i32) -> (i32, i32) {
    %c0_i32 = arith.constant 0 : i32
    %c0_i32_0 = arith.constant 0 : i32
    %c0_i32_1 = arith.constant 0 : i32
    return %c0_i32, %c0_i32_0 : i32, i32
  }
  func.func @transform_3(%arg0: i32) -> (i32, i32) {
    %c0_i32 = arith.constant 0 : i32
    %c0_i32_0 = arith.constant 0 : i32
    %c0_i32_1 = arith.constant 0 : i32
    return %c0_i32, %c0_i32_0 : i32, i32
  }
  func.func @transform_4(%arg0: i32) -> (i32, i32) {
    %c0_i32 = arith.constant 0 : i32
    %c0_i32_0 = arith.constant 0 : i32
    %c0_i32_1 = arith.constant 0 : i32
    return %c0_i32, %c0_i32_0 : i32, i32
  }
  func.func @transform_5(%arg0: i32) -> (i32, i32) {
    %c0_i32 = arith.constant 0 : i32
    %c0_i32_0 = arith.constant 0 : i32
    %c0_i32_1 = arith.constant 0 : i32
    return %c0_i32, %c0_i32_0 : i32, i32
  }
  func.func @transform_6(%arg0: i32) -> (i32, i32) {
    %c0_i32 = arith.constant 0 : i32
    %c0_i32_0 = arith.constant 0 : i32
    return %arg0, %c0_i32 : i32, i32
  }
}

</mosaic_0001>

<bundles_post_ra>
// kernel: tpu_custom_call.1
= control target key start
LH: loop header
LB: loop body
LE: loop exit
PB: predicated region body
PF: predicated region fallthrough
CT: control target
= control target key end

     0   :  { %11 = vsyncpa [#allocation3], 0  ;;  %s4117_s0 = inlined_call_operand.hbm [shape: f32[512,128], index: 0, kind: input, shape index: {}]   ;;  %s4118_s1 = inlined_call_operand.hbm [shape: bf16[128,256], index: 1, kind: input, shape index: {}]   ;;  %s4119_s2 = inlined_call_operand.hbm [shape: bf16[256,256], index: 2, kind: input, shape index: {}]   ;;  %s4120_s3 = inlined_call_operand.hbm [shape: bf16[256,256], index: 3, kind: input, shape index: {}]   ;;  %s4121_s4 = inlined_call_operand.vmem [shape: f32[1,128], index: 4, kind: input, shape index: {}]   ;;  %s4122_s5 = inlined_call_operand.hbm [shape: bf16[128,256], index: 5, kind: input, shape index: {}]   ;;  %s4123_s6 = inlined_call_operand.hbm [shape: f32[512,128], index: 6, kind: output, shape index: {}]  }
   0x1   :  { %13 = vsyncpa [#allocation3 + $0x1], 0 }
   0x2   :  { %14 = vsyncpa [#allocation6], 0 }
   0x3   :  { %15 = vsyncpa [#allocation9], 0 }
   0x4   :  { %16 = vsyncpa [#allocation4], 0 }
   0x5   :  { %18 = vsyncpa [#allocation4 + $0x1], 0  ;;  %s3447_s21 = smov 0   ;;  %s3449_s22 = smov 0  }
   0x6   :  { %s3451_s23 = smov 0   ;;  %s3453_s24 = smov 0  }
   0x7 LB: > { %s3468_s25 = sadd.s32 4294967295, %s3399_s24   ;;  %s2325_s26 = sadd.s32 4294967294, %s3399_s24   ;;  %s3399_s24 = sphi %s3453_s24, %s4146_s24   ;;  %s3395_s23 = sphi %s3451_s23, %s4145_s23   ;;  %s3391_s22 = sphi %s3449_s22, %s4144_s22   ;;  %s3387_s21 = sphi %s3447_s21, %s4143_s21  }
   0x8   : > { %p44_p0 = scmp.ne.s32.totalorder %s3391_s22, %s3387_s21  ;;  %p4124_p1 = scmp.eq.s32.totalorder %s3468_s25, 0 }
   0x9   : > { %p179_p3 = scmp.eq.s32.totalorder %s2325_s26, 1  ;;  %p2326_p5 = scmp.ge.s32.totalorder %s3399_s24, 1 }
   0xa   : > { %p3477_p4 = por %p4124_p1, %p44_p0  ;;  %p186_p7 = scmp.lt.s32.totalorder %s3399_s24, 3 }
   0xb   : > { %p3482_p6 = por %p179_p3, %p44_p0  ;;  %s3401_s30 = smov [#allocation5]  }
   0xc   : > { %s4127_s27 = scalar_select %p3477_p4, 1, 0 }
   0xd   : > { %s4128_s28 = scalar_select %p3482_p6, 1, 0 }
   0xe   : > { %p3487_p8 = pnand %p2326_p5, %p186_p7  ;;  %s198_s7 = sshll.u32 %s3401_s30, 4  ;;  %s3491_s7 = int_to_ptr.vmem [resolvable:$true] %s198_s7 }
   0xf   : > { %s3402_s9 = smov [#allocation8]   ;;  %s3403_s11 = smov [#allocation7]  }
  0x10   : > { %s4129_s29 = scalar_select %p3487_p8, 1, 0 }
  0x11   : > { %p2914_p9 = pneg %p3487_p8  ;;  %s224_s10 = sshll.u32 %s3402_s9, 4  ;;  %s3502_s10 = int_to_ptr.vmem [resolvable:$true] %s224_s10 }
  0x12   : > { %s3504_s12 = sshll.u32 %s3403_s11, 4  ;;  %s3183_s15 = scalar_lea.hbm %s4118_s1, 2048  ;;  %s212_s12 = int_to_ptr.vmem [resolvable:$true] %s3504_s12 }
  0x13   : > { %p3498_p11 = pnand %p2914_p9, %p4124_p1  ;;  %p3184_p12 = scmp.ne.s32.totalorder %s4118_s1, %s3183_s15 }
  0x14   : > { %p3190_p5 = scmp.lt.u32.totalorder %s3183_s15, %s4118_s1 }
  0x15   : > { %p3514_p13 = pneg %p3498_p11 }
  0x17   : > { %p3186_p0 = pnand %p3514_p13, %p3184_p12 }
  0x19   : > { %p3187_p3 = pneg %p3186_p0 }
  0x1b   : > { %p3192_p7 = pnand %p3190_p5, %p3187_p3 }
  0x1d   : > { %3195 = shalt.err (!%p3192_p7)
}
  0x1e   : > { %s3196_s26 = scalar_lea.vmem %s3491_s7, 2048  ;;  %p3204_p2 = scmp.lt.s32.totalorder %s3491_s7, %s3491_s7 }
  0x1f   : > { %p3197_p9 = scmp.ne.s32.totalorder %s3491_s7, %s3196_s26  ;;  %p3205_p6 = scmp.lt.s32.totalorder %s3196_s26, %s3196_s26 }
  0x21   : > { %p3199_p10 = pnand %p3197_p9, %p3514_p13  ;;  %p3206_p12 = por %p3205_p6, %p3204_p2 }
  0x23   : > { %p3200_p1 = pneg %p3199_p10 }
  0x25   : > { %p3207_p0 = pnand %p3206_p12, %p3200_p1 }
  0x27   : > { %3210 = shalt.err (!%p3207_p0)
}
  0x28   : > { %s3404_s30 = smov 128   ;;  %s3405_s9 = smov 8  }
  0x29   : > { %2917 = dma.hbm_to_vmem [thread:$0]  (!%p3498_p11), %s4118_s1, 2048, %s3491_s7, [#allocation6], %s3404_s30, %s3404_s30, %s3405_s9  }
  0x2a   : > { %s3211_s16 = scalar_lea.hbm %s4120_s3, 4096 }
  0x2b   : > { %p3212_p1 = scmp.ne.s32.totalorder %s4120_s3, %s3211_s16  ;;  %p3218_p10 = scmp.lt.u32.totalorder %s3211_s16, %s4120_s3 }
  0x2d   : > { %p3214_p2 = pnand %p3212_p1, %p3514_p13 }
  0x2f   : > { %p3215_p6 = pneg %p3214_p2 }
  0x31   : > { %p3220_p3 = pnand %p3218_p10, %p3215_p6 }
  0x33   : > { %3223 = shalt.err (!%p3220_p3)
}
  0x34   : > { %s3224_s7 = scalar_lea.vmem %s3502_s10, 4096  ;;  %p3232_p12 = scmp.lt.s32.totalorder %s3502_s10, %s3502_s10 }
  0x35   : > { %p3225_p5 = scmp.ne.s32.totalorder %s3502_s10, %s3224_s7  ;;  %p3233_p0 = scmp.lt.s32.totalorder %s3224_s7, %s3224_s7 }
  0x37   : > { %p3227_p7 = pnand %p3225_p5, %p3514_p13  ;;  %p3234_p1 = por %p3233_p0, %p3232_p12 }
  0x39   : > { %p3228_p9 = pneg %p3227_p7 }
  0x3b   : > { %p3235_p2 = pnand %p3234_p1, %p3228_p9 }
  0x3d   : > { %3238 = shalt.err (!%p3235_p2)
}
  0x3e   : > { %2923 = dma.hbm_to_vmem [thread:$0]  (!%p3498_p11), %s4120_s3, 4096, %s3502_s10, [#allocation9], %s3404_s30, %s3404_s30, %s3405_s9  }
  0x3f   : > { %s3239_s16 = scalar_lea.hbm %s4119_s2, 4096 }
  0x40   : > { %p3240_p6 = scmp.ne.s32.totalorder %s4119_s2, %s3239_s16  ;;  %p3246_p5 = scmp.lt.u32.totalorder %s3239_s16, %s4119_s2 }
  0x42   : > { %p3242_p10 = pnand %p3240_p6, %p3514_p13 }
  0x44   : > { %p3243_p3 = pneg %p3242_p10 }
  0x46   : > { %p3248_p7 = pnand %p3246_p5, %p3243_p3 }
  0x48   : > { %3251 = shalt.err (!%p3248_p7)
}
  0x49   : > { %s3252_s7 = scalar_lea.vmem %s212_s12, 4096  ;;  %p3260_p1 = scmp.lt.s32.totalorder %s212_s12, %s212_s12 }
  0x4a   : > { %p3253_p9 = scmp.ne.s32.totalorder %s212_s12, %s3252_s7  ;;  %p3261_p2 = scmp.lt.s32.totalorder %s3252_s7, %s3252_s7 }
  0x4c   : > { %p3255_p12 = pnand %p3253_p9, %p3514_p13  ;;  %p3262_p4 = por %p3261_p2, %p3260_p1 }
  0x4e   : > { %p3256_p0 = pneg %p3255_p12 }
  0x50   : > { %p3263_p8 = pnand %p3262_p4, %p3256_p0 }
  0x52   : > { %3266 = shalt.err (!%p3263_p8)
}
  0x53   : > { %2920 = dma.hbm_to_vmem [thread:$0]  (!%p3498_p11), %s4119_s2, 4096, %s212_s12, [#allocation6], %s3404_s30, %s3404_s30, %s3405_s9  }
  0x54   : > { %s3406_s13 = smov [#allocation10]   ;;  %s3267_s17 = scalar_lea.hbm %s4122_s5, 2048 }
  0x55   : > { %s240_s14 = sshll.u32 %s3406_s13, 4  ;;  %p3268_p4 = scmp.ne.s32.totalorder %s4122_s5, %s3267_s17  ;;  %s241_s14 = int_to_ptr.vmem [resolvable:$true] %s240_s14 }
  0x56   : > { %p3274_p10 = scmp.lt.u32.totalorder %s3267_s17, %s4122_s5 }
  0x57   : > { %p3270_p8 = pnand %p3268_p4, %p3514_p13 }
  0x59   : > { %p3271_p6 = pneg %p3270_p8 }
  0x5b   : > { %p3276_p3 = pnand %p3274_p10, %p3271_p6 }
  0x5d   : > { %3279 = shalt.err (!%p3276_p3)
}
  0x5e   : > { %s3280_s12 = scalar_lea.vmem %s241_s14, 2048  ;;  %p3288_p12 = scmp.lt.s32.totalorder %s241_s14, %s241_s14 }
  0x5f   : > { %p3281_p5 = scmp.ne.s32.totalorder %s241_s14, %s3280_s12  ;;  %p3289_p0 = scmp.lt.s32.totalorder %s3280_s12, %s3280_s12 }
  0x61   : > { %p3283_p7 = pnand %p3281_p5, %p3514_p13  ;;  %p3290_p1 = por %p3289_p0, %p3288_p12 }
  0x63   : > { %p3284_p9 = pneg %p3283_p7 }
  0x65   : > { %p3291_p2 = pnand %p3290_p1, %p3284_p9 }
  0x67   : > { %3294 = shalt.err (!%p3291_p2)
}
  0x68   : > { %2926 = dma.hbm_to_vmem [thread:$0]  (!%p3498_p11), %s4122_s5, 2048, %s241_s14, [#allocation9], %s3404_s30, %s3404_s30, %s3405_s9  }
  0x69   : > { %s3608_s18 = sadd.s32 1, %s3399_s24   ;;  %s31_s8 = sadd.s32 1, %s3395_s23 }
  0x6a   : > { %s28_s13 = ssub.s32 %s3399_s24, %s3608_s18  ;;  %p38_p13 = scmp.ne.s32.totalorder %s3395_s23, %s3391_s22 }
  0x6b   : > { %p29_p4 = scmp.eq.s32.totalorder %s28_s13, 0  ;;  %p39_p8 = scmp.eq.s32.totalorder %s3399_s24, 0 }
  0x6c   : > { %p4132_p6 = scmp.eq.s32.totalorder %s3468_s25, 1  ;;  %p2939_p3 = scmp.lt.s32.totalorder %s3399_s24, 2 }
  0x6d   : > { %s3624_s16 = scalar_select %p29_p4, %s3395_s23, %s31_s8  }
  0x6e   : > { %p3618_p10 = por %p4132_p6, %p38_p13  ;;  %p40_p5 = por %p39_p8, %p38_p13 }
  0x6f   : > { %s254_s17 = sand.u32 1, %s3395_s23   ;;  %s2444_s14 = sshll.u32 %s3399_s24, 12 }
  0x70   : > { %s2332_s19 = sshll.u32 %s254_s17, 8  ;;  %s3631_s7 = scalar_lea.hbm %s4117_s0, %s2444_s14 }
  0x71   : > { %s258_s12 = scalar_lea.vmem [#allocation2], %s2332_s19  ;;  %p3635_p11 = pnand %p2939_p3, %p40_p5 }
  0x72   : > { %s265_s10 = sshll.u32 %s258_s12, 4  ;;  %s3639_s8 = scalar_lea.sflag [#allocation3], %s254_s17  ;;  %s3633_s10 = int_to_ptr.vmem [resolvable:$true] %s265_s10 }
  0x73   : > { %s3295_s13 = scalar_lea.hbm %s3631_s7, 4096  ;;  %p3297_p9 = pneg %p3635_p11 }
  0x74   : > { %p3296_p7 = scmp.ne.s32.totalorder %s3631_s7, %s3295_s13  ;;  %s3300_s20 = scalar_lea.hbm %s4117_s0, 8192 }
  0x75   : > { %p3301_p1 = scmp.lt.u32.totalorder %s3631_s7, %s4117_s0  ;;  %p3302_p2 = scmp.lt.u32.totalorder %s3300_s20, %s3295_s13 }
  0x76   : > { %p3298_p12 = pnand %p3297_p9, %p3296_p7  ;;  %p3304_p4 = scmp.lt.u32.totalorder %s3295_s13, %s3631_s7 }
  0x77   : > { %p3303_p13 = por %p3302_p2, %p3301_p1 }
  0x78   : > { %p3299_p0 = pneg %p3298_p12 }
  0x79   : > { %p3305_p8 = por %p3304_p4, %p3303_p13 }
  0x7b   : > { %p3306_p6 = pnand %p3305_p8, %p3299_p0 }
  0x7d   : > { %3309 = shalt.err (!%p3306_p6)
}
  0x7e   : > { %s3310_s17 = scalar_lea.vmem %s3633_s10, 4096  ;;  %s3407_s19 = smov [#allocation2]  }
  0x7f   : > { %p3311_p3 = scmp.ne.s32.totalorder %s3633_s10, %s3310_s17  ;;  %s3315_s14 = sshll.u32 %s3407_s19, 4  ;;  %s3316_s14 = int_to_ptr.vmem [resolvable:$false] %s3315_s14 }
  0x80   : > { %s3317_s26 = scalar_lea.vmem %s3316_s14, 8192  ;;  %p3318_p12 = scmp.lt.s32.totalorder %s3633_s10, %s3316_s14 }
  0x81   : > { %p3313_p5 = pnand %p3311_p3, %p3297_p9  ;;  %p3319_p1 = scmp.lt.s32.totalorder %s3317_s26, %s3310_s17 }
  0x83   : > { %p3314_p7 = pneg %p3313_p5  ;;  %p3320_p2 = por %p3319_p1, %p3318_p12 }
  0x85   : > { %p3321_p13 = pnand %p3320_p2, %p3314_p7 }
  0x87   : > { %3324 = shalt.err (!%p3321_p13)
}
  0x88   : > { %2930 = dma.hbm_to_vmem [thread:$0]  (!%p3635_p11), %s3631_s7, 4096, %s3633_s10, %s3639_s8, %s3404_s30, %s3404_s30, %s3405_s9  }
  0x89   : > { %p4135_p9 = scmp.ne.s32.totalorder %s4129_s29, 0 }
  0x8a   : > { %s3673_s13 = sand.u32 (!%p4135_p9), 1, %s3391_s22   ;;  %p4136_p0 = scmp.ne.s32.totalorder (!%p4135_p9), %s4127_s27, 0 }
  0x8b   : > { %277 = sbr.rel (%p4135_p9) target bundleno = 1446 (0x5a6), region = 44  ;;  %s2336_s20 = sshll.u32 (!%p4135_p9), %s3673_s13, 8 }
  0x8c   : > { %s280_s12 = scalar_lea.sflag (!%p4135_p9), [#allocation3], %s3673_s13  ;;  %s3679_s11 = scalar_lea.vmem (!%p4135_p9), [#allocation2], %s2336_s20 }
  0x92   : > { %3370 = dma.done.wait (%p4136_p0), %s280_s12, 4096  }
  0x93   : > { %3372 = vsyncadd (%p4136_p0), %s280_s12, 4294963200  ;;  %p4137_p11 = scmp.eq.s32.totalorder %s3468_s25, 0 }
  0x95   : > { %3374 = dma.done.wait (%p4137_p11), [#allocation6], 6144   ;;  %p4138_p4 = pmov %p4137_p11 }
  0x97   : > { %3376 = vsyncadd (%p4138_p4), [#allocation6], 4294961152  ;;  %p4139_p8 = pmov %p4138_p4 }
  0x98   : > { %p4140_p6 = pmov %p4138_p4 }
  0x99   : > { %3378 = dma.done.wait (%p4139_p8), [#allocation9], 6144  }
  0x9a   : > { %3380 = vsyncadd (%p4140_p6), [#allocation9], 4294961152  ;;  %v3408_v0 = vmov 0   ;;  %v2986_v1 = vld [vmem:[#allocation5 + $0x4] ss:$8 sps:$4 sm:$0xff]   ;;  %v333_v20 = vld [vmem:[%s3679_s11 + $0x10] sm:$0xff] }
  0x9b   : > { %507 = vmatprep.mubr.bf16.mxu0 %v3408_v0  ;;  %v2988_v2 = vld [vmem:[#allocation5] ss:$8 sps:$4 sm:$0xff]   ;;  %475 = vmatprep.subr.bf16.mxu0 %v2986_v1  ;;  %v2989_v3 = vld [vmem:[#allocation5 + $0x14] ss:$8 sps:$4 sm:$0xff]   ;;  %v2991_v4 = vld [vmem:[#allocation5 + $0x10] ss:$8 sps:$4 sm:$0xff]  }
  0x9c   : > { %476 = vmatpush1.bf16.msra.mxu0 %v2988_v2  ;;  %v2992_v5 = vld [vmem:[#allocation5 + $0x24] ss:$8 sps:$4 sm:$0xff]   ;;  %v2994_v6 = vld [vmem:[#allocation5 + $0x20] ss:$8 sps:$4 sm:$0xff]   ;;  %v2995_v7 = vld [vmem:[#allocation5 + $0x34] ss:$8 sps:$4 sm:$0xff]  }
  0x9d   : > { %477 = vmatprep.subr.bf16.mxu0 %v2989_v3  ;;  %v2997_v8 = vld [vmem:[#allocation5 + $0x30] ss:$8 sps:$4 sm:$0xff]   ;;  %v2998_v9 = vld [vmem:[#allocation5 + $0x44] ss:$8 sps:$4 sm:$0xff]   ;;  %v3000_v10 = vld [vmem:[#allocation5 + $0x40] ss:$8 sps:$4 sm:$0xff]  }
  0x9e   : > { %v3001_v11 = vld [vmem:[#allocation5 + $0x54] ss:$8 sps:$4 sm:$0xff]   ;;  %v3003_v12 = vld [vmem:[#allocation5 + $0x50] ss:$8 sps:$4 sm:$0xff]   ;;  %v3004_v13 = vld [vmem:[#allocation5 + $0x64] ss:$8 sps:$4 sm:$0xff]  }
  0x9f   : > { %v3006_v14 = vld [vmem:[#allocation5 + $0x60] ss:$8 sps:$4 sm:$0xff]   ;;  %v3007_v15 = vld [vmem:[#allocation5 + $0x74] ss:$8 sps:$4 sm:$0xff]   ;;  %v3009_v16 = vld [vmem:[#allocation5 + $0x70] ss:$8 sps:$4 sm:$0xff]  }
  0xa0   : > { %478 = vmatpush1.bf16.msra.mxu0 %v2991_v4  ;;  %v331_v17 = vld [vmem:[%s3679_s11] sm:$0xff]  ;;  %v332_v18 = vld [vmem:[%s3679_s11 + $0x8] sm:$0xff]  ;;  %v334_v21 = vld [vmem:[%s3679_s11 + $0x18] sm:$0xff]  ;;  %s4032_s30 = scalar_lea.vmem [#allocation11], %s2336_s20  ;;  %s2445_s9 = sshll.u32 %s3468_s25, 12 }
  0xa1   : > { %479 = vmatprep.subr.bf16.mxu0 %v2992_v5  ;;  %v363_v19 = vpack.c.bf16 %v332_v18, %v331_v17  ;;  %v364_v22 = vpack.c.bf16 %v334_v21, %v333_v20  ;;  %v335_v23 = vld [vmem:[%s3679_s11 + $0x20] sm:$0xff]  ;;  %v336_v24 = vld [vmem:[%s3679_s11 + $0x28] sm:$0xff]  ;;  %v337_v26 = vld [vmem:[%s3679_s11 + $0x30] sm:$0xff]  ;;  %s2214_s7 = sshll.u32 %s4032_s30, 4  ;;  %s4069_s17 = scalar_lea.hbm %s4123_s6, %s2445_s9  ;;  %s4071_s7 = int_to_ptr.vmem [resolvable:$true] %s2214_s7 }
  0xa2   : > { %v365_v25 = vpack.c.bf16 %v336_v24, %v335_v23  ;;  %v338_v27 = vld [vmem:[%s3679_s11 + $0x38] sm:$0xff]  ;;  %v339_v29 = vld [vmem:[%s3679_s11 + $0x40] sm:$0xff]  ;;  %v340_v30 = vld [vmem:[%s3679_s11 + $0x48] sm:$0xff]  ;;  %s2201_s19 = scalar_lea.sflag [#allocation4], %s3673_s13  ;;  %s3325_s25 = scalar_lea.vmem %s4071_s7, 4096 }
  0xa3   : > { %v366_v28 = vpack.c.bf16 %v338_v27, %v337_v26  ;;  %v367_v31 = vpack.c.bf16 %v340_v30, %v339_v29  ;;  %v341_v32 = vld [vmem:[%s3679_s11 + $0x50] sm:$0xff]  ;;  %v342_v33 = vld [vmem:[%s3679_s11 + $0x58] sm:$0xff]  ;;  %v343_v35 = vld [vmem:[%s3679_s11 + $0x60] sm:$0xff]  ;;  %p3326_p3 = scmp.ne.s32.totalorder %s4071_s7, %s3325_s25  ;;  %s3409_s14 = smov [#allocation11]  }
  0xa4   : > { %480 = vmatpush1.bf16.msra.mxu0 %v2994_v6  ;;  %v368_v34 = vpack.c.bf16 %v342_v33, %v341_v32  ;;  %v344_v36 = vld [vmem:[%s3679_s11 + $0x68] sm:$0xff]  ;;  %v345_v38 = vld [vmem:[%s3679_s11 + $0x70] sm:$0xff]  ;;  %v346_v39 = vld [vmem:[%s3679_s11 + $0x78] sm:$0xff]  ;;  %s3329_s26 = sshll.u32 %s3409_s14, 4  ;;  %s3330_s26 = int_to_ptr.vmem [resolvable:$false] %s3329_s26 }
  0xa5   : > { %481 = vmatprep.subr.bf16.mxu0 %v2995_v7  ;;  %v369_v37 = vpack.c.bf16 %v344_v36, %v343_v35  ;;  %v370_v40 = vpack.c.bf16 %v346_v39, %v345_v38  ;;  %v347_v41 = vld [vmem:[%s3679_s11 + $0x80] sm:$0xff]  ;;  %v348_v42 = vld [vmem:[%s3679_s11 + $0x88] sm:$0xff]  ;;  %v349_v44 = vld [vmem:[%s3679_s11 + $0x90] sm:$0xff]  ;;  %p3327_p5 = pnand %p3326_p3, %p3618_p10  ;;  %s3331_s20 = scalar_lea.vmem %s3330_s26, 8192 }
  0xa6   : > { %v371_v43 = vpack.c.bf16 %v348_v42, %v347_v41  ;;  %v350_v45 = vld [vmem:[%s3679_s11 + $0x98] sm:$0xff]  ;;  %v351_v47 = vld [vmem:[%s3679_s11 + $0xa0] sm:$0xff]  ;;  %v352_v48 = vld [vmem:[%s3679_s11 + $0xa8] sm:$0xff]  ;;  %p3332_p12 = scmp.lt.s32.totalorder %s4071_s7, %s3330_s26  ;;  %p3333_p1 = scmp.lt.s32.totalorder %s3331_s20, %s3325_s25 }
  0xa7   : > { %v372_v46 = vpack.c.bf16 %v350_v45, %v349_v44  ;;  %v373_v49 = vpack.c.bf16 %v352_v48, %v351_v47  ;;  %v353_v50 = vld [vmem:[%s3679_s11 + $0xb0] sm:$0xff]  ;;  %v354_v51 = vld [vmem:[%s3679_s11 + $0xb8] sm:$0xff]  ;;  %v355_v53 = vld [vmem:[%s3679_s11 + $0xc0] sm:$0xff]  ;;  %p3328_p7 = pneg %p3327_p5 }
  0xa8   : > { %482 = vmatpush1.bf16.msra.mxu0 %v2997_v8  ;;  %v374_v52 = vpack.c.bf16 %v354_v51, %v353_v50  ;;  %v356_v54 = vld [vmem:[%s3679_s11 + $0xc8] sm:$0xff]  ;;  %v357_v56 = vld [vmem:[%s3679_s11 + $0xd0] sm:$0xff]  ;;  %v358_v57 = vld [vmem:[%s3679_s11 + $0xd8] sm:$0xff]  ;;  %p3334_p2 = por %p3333_p1, %p3332_p12 }
  0xa9   : > { %483 = vmatprep.subr.bf16.mxu0 %v2998_v9  ;;  %v375_v55 = vpack.c.bf16 %v356_v54, %v355_v53  ;;  %v376_v58 = vpack.c.bf16 %v358_v57, %v357_v56  ;;  %v359_v59 = vld [vmem:[%s3679_s11 + $0xe0] sm:$0xff]  ;;  %v360_v60 = vld [vmem:[%s3679_s11 + $0xe8] sm:$0xff]  ;;  %v361_v62 = vld [vmem:[%s3679_s11 + $0xf0] sm:$0xff] }
  0xaa   : > { %v377_v61 = vpack.c.bf16 %v360_v60, %v359_v59  ;;  %v362_v63 = vld [vmem:[%s3679_s11 + $0xf8] sm:$0xff]  ;;  %v3741_v2 = vld [vmem:[#allocation7 + $0x4] ss:$8 sps:$4 sm:$0xff]   ;;  %p3335_p13 = pnand %p3334_p2, %p3328_p7 }
  0xab   : > { %v378_v1 = vpack.c.bf16 %v362_v63, %v361_v62  ;;  %v3015_v3 = vld [vmem:[#allocation8 + $0x4] ss:$8 sps:$4 sm:$0xff]   ;;  %908 = vmatprep.mubr.bf16.mxu1 %v3741_v2 }
  0xac   : > { %484 = vmatpush1.bf16.msra.mxu0 %v3000_v10 }
  0xad   : > { %485 = vmatprep.subr.bf16.mxu0 %v3001_v11 }
  0xb0   : > { %486 = vmatpush1.bf16.msra.mxu0 %v3003_v12 }
  0xb1   : > { %487 = vmatprep.subr.bf16.mxu0 %v3004_v13 }
  0xb4   : > { %488 = vmatpush1.bf16.msra.mxu0 %v3006_v14 }
  0xb5   : > { %489 = vmatprep.subr.bf16.mxu0 %v3007_v15 }
  0xb8   : > { %490 = vmatpush1.bf16.msra.mxu0 %v3009_v16 }
  0xbb   : > { %508 = vmatmul.mubr.bf16.vlgmr.msra.gmra.mrb[0].mxu0 %v363_v19 }
  0xbc   : > { %517 = vmatprep.mubr.bf16.mxu0 %v3408_v0 }
  0xc3   : > { %518 = vmatmul.mubr.bf16.gmra.mrb[4].mxu0 %v364_v22 }
  0xc4   : > { %527 = vmatprep.mubr.bf16.mxu0 %v3408_v0 }
  0xcb   : > { %528 = vmatmul.mubr.bf16.gmra.mrb[8].mxu0 %v365_v25 }
  0xcc   : > { %537 = vmatprep.mubr.bf16.mxu0 %v3408_v0 }
  0xd3   : > { %538 = vmatmul.mubr.bf16.gmra.mrb[12].mxu0 %v366_v28 }
  0xd4   : > { %547 = vmatprep.mubr.bf16.mxu0 %v3408_v0 }
  0xdb   : > { %548 = vmatmul.mubr.bf16.gmra.mrb[16].mxu0 %v367_v31 }
  0xdc   : > { %557 = vmatprep.mubr.bf16.mxu0 %v3408_v0 }
  0xe3   : > { %558 = vmatmul.mubr.bf16.gmra.mrb[20].mxu0 %v368_v34 }
  0xe4   : > { %567 = vmatprep.mubr.bf16.mxu0 %v3408_v0 }
  0xeb   : > { %568 = vmatmul.mubr.bf16.gmra.mrb[24].mxu0 %v369_v37 }
  0xec   : > { %577 = vmatprep.mubr.bf16.mxu0 %v3408_v0 }
  0xf3   : > { %578 = vmatmul.mubr.bf16.gmra.mrb[28].mxu0 %v370_v40 }
  0xf4   : > { %587 = vmatprep.mubr.bf16.mxu0 %v3408_v0 }
  0xfb   : > { %588 = vmatmul.mubr.bf16.gmra.mrb[32].mxu0 %v371_v43 }
  0xfc   : > { %597 = vmatprep.mubr.bf16.mxu0 %v3408_v0 }
 0x103   : > { %598 = vmatmul.mubr.bf16.gmra.mrb[36].mxu0 %v372_v46 }
 0x104   : > { %607 = vmatprep.mubr.bf16.mxu0 %v3408_v0 }
 0x10b   : > { %608 = vmatmul.mubr.bf16.gmra.mrb[40].mxu0 %v373_v49 }
 0x10c   : > { %617 = vmatprep.mubr.bf16.mxu0 %v3408_v0 }
 0x113   : > { %618 = vmatmul.mubr.bf16.gmra.mrb[44].mxu0 %v374_v52 }
 0x114   : > { %627 = vmatprep.mubr.bf16.mxu0 %v3408_v0 }
 0x11b   : > { %628 = vmatmul.mubr.bf16.gmra.mrb[48].mxu0 %v375_v55 }
 0x11c   : > { %637 = vmatprep.mubr.bf16.mxu0 %v3408_v0 }
 0x123   : > { %638 = vmatmul.mubr.bf16.gmra.mrb[52].mxu0 %v376_v58 }
 0x124   : > { %647 = vmatprep.mubr.bf16.mxu0 %v3408_v0 }
 0x12b   : > { %648 = vmatmul.mubr.bf16.gmra.mrb[56].mxu0 %v377_v61 }
 0x12c   : > { %657 = vmatprep.mubr.bf16.mxu0 %v3408_v0 }
 0x133   : > { %658 = vmatmul.mubr.bf16.gmra.mrb[60].mxu0 %v378_v1 }
 0x134   : > { %1277 = vmatprep.mubr.bf16.mxu0 %v3015_v3 }
 0x18e   : > { %v509_v4 = vpop.f32.mrb[0].mxu0 }
 0x18f   : > { %v511_v5 = vpop.f32.mrb[1].mxu0 }
 0x190   : > { %v513_v6 = vpop.f32.mrb[2].mxu0 }
 0x191   : > { %v700_v7 = vpack.c.bf16 %v513_v6, %v509_v4  ;;  %v515_v8 = vpop.f32.mrb[3].mxu0 }
 0x192   : > { %v1069_v9 = vpack.c.bf16 %v515_v8, %v511_v5 }
 0x196   : > { %v519_v10 = vpop.f32.mrb[4].mxu0 }
 0x197   : > { %v521_v11 = vpop.f32.mrb[5].mxu0 }
 0x198   : > { %v523_v12 = vpop.f32.mrb[6].mxu0 }
 0x199   : > { %v701_v13 = vpack.c.bf16 %v523_v12, %v519_v10  ;;  %v525_v14 = vpop.f32.mrb[7].mxu0 }
 0x19a   : > { %v1070_v15 = vpack.c.bf16 %v525_v14, %v521_v11 }
 0x19e   : > { %v3744_v16 = vpop.f32.mrb[8].mxu0 }
 0x19f   : > { %v3746_v17 = vpop.f32.mrb[9].mxu0 }
 0x1a0   : > { %v533_v18 = vpop.f32.mrb[10].mxu0 }
 0x1a1   : > { %v702_v19 = vpack.c.bf16 %v533_v18, %v3744_v16  ;;  %v535_v20 = vpop.f32.mrb[11].mxu0 }
 0x1a2   : > { %v1071_v21 = vpack.c.bf16 %v535_v20, %v3746_v17 }
 0x1a6   : > { %v3750_v22 = vpop.f32.mrb[12].mxu0 }
 0x1a7   : > { %v3752_v23 = vpop.f32.mrb[13].mxu0 }
 0x1a8   : > { %v3754_v24 = vpop.f32.mrb[14].mxu0 }
 0x1a9   : > { %v703_v25 = vpack.c.bf16 %v3754_v24, %v3750_v22  ;;  %v3758_v26 = vpop.f32.mrb[15].mxu0 }
 0x1aa   : > { %v1072_v27 = vpack.c.bf16 %v3758_v26, %v3752_v23 }
 0x1ae   : > { %v3762_v28 = vpop.f32.mrb[16].mxu0 }
 0x1af   : > { %v3764_v29 = vpop.f32.mrb[17].mxu0 }
 0x1b0   : > { %v3766_v30 = vpop.f32.mrb[18].mxu0 }
 0x1b1   : > { %v704_v31 = vpack.c.bf16 %v3766_v30, %v3762_v28  ;;  %v3770_v32 = vpop.f32.mrb[19].mxu0 }
 0x1b2   : > { %v1073_v33 = vpack.c.bf16 %v3770_v32, %v3764_v29 }
 0x1b6   : > { %v3774_v34 = vpop.f32.mrb[20].mxu0 }
 0x1b7   : > { %v3776_v35 = vpop.f32.mrb[21].mxu0 }
 0x1b8   : > { %v3778_v36 = vpop.f32.mrb[22].mxu0 }
 0x1b9   : > { %v705_v37 = vpack.c.bf16 %v3778_v36, %v3774_v34  ;;  %v3782_v38 = vpop.f32.mrb[23].mxu0 }
 0x1ba   : > { %v1074_v39 = vpack.c.bf16 %v3782_v38, %v3776_v35 }
 0x1be   : > { %v3786_v40 = vpop.f32.mrb[24].mxu0 }
 0x1bf   : > { %v3788_v41 = vpop.f32.mrb[25].mxu0 }
 0x1c0   : > { %v3790_v42 = vpop.f32.mrb[26].mxu0 }
 0x1c1   : > { %v706_v43 = vpack.c.bf16 %v3790_v42, %v3786_v40  ;;  %v3794_v44 = vpop.f32.mrb[27].mxu0  ;;  %v3013_v40 = vld [vmem:[#allocation8] ss:$8 sps:$4 sm:$0xff]   ;;  %v3016_v42 = vld [vmem:[#allocation7 + $0x14] ss:$8 sps:$4 sm:$0xff]  }
 0x1c2   : > { %v1075_v45 = vpack.c.bf16 %v3794_v44, %v3788_v41  ;;  %v3019_v41 = vld [vmem:[#allocation8 + $0x14] ss:$8 sps:$4 sm:$0xff]  }
 0x1c3   : > { %v3111_v44 = vld [vmem:[#allocation10 + $0x14] ss:$8 sps:$4 sm:$0xff]  }
 0x1c6   : > { %v3798_v46 = vpop.f32.mrb[28].mxu0 }
 0x1c7   : > { %v3800_v47 = vpop.f32.mrb[29].mxu0 }
 0x1c8   : > { %v3802_v48 = vpop.f32.mrb[30].mxu0 }
 0x1c9   : > { %v707_v49 = vpack.c.bf16 %v3802_v48, %v3798_v46  ;;  %v3806_v50 = vpop.f32.mrb[31].mxu0  ;;  %v3114_v46 = vld [vmem:[#allocation10 + $0x24] ss:$8 sps:$4 sm:$0xff]   ;;  %v3018_v48 = vld [vmem:[#allocation7 + $0x10] ss:$8 sps:$4 sm:$0xff]  }
 0x1ca   : > { %v1076_v51 = vpack.c.bf16 %v3806_v50, %v3800_v47  ;;  %v3117_v47 = vld [vmem:[#allocation10 + $0x34] ss:$8 sps:$4 sm:$0xff]   ;;  %v3115_v50 = vld [vmem:[#allocation10 + $0x30] ss:$8 sps:$4 sm:$0xff]  }
 0x1ce   : > { %v589_v52 = vpop.f32.mrb[32].mxu0 }
 0x1cf   : > { %v591_v53 = vpop.f32.mrb[33].mxu0 }
 0x1d0   : > { %v593_v54 = vpop.f32.mrb[34].mxu0 }
 0x1d1   : > { %v595_v55 = vpop.f32.mrb[35].mxu0  ;;  %v708_v56 = vpack.c.bf16 %v593_v54, %v589_v52  ;;  %v3022_v52 = vld [vmem:[#allocation7 + $0x24] ss:$8 sps:$4 sm:$0xff]   ;;  %v3112_v54 = vld [vmem:[#allocation10 + $0x20] ss:$8 sps:$4 sm:$0xff]  }
 0x1d2   : > { %v1077_v57 = vpack.c.bf16 %v595_v55, %v591_v53  ;;  %v3025_v53 = vld [vmem:[#allocation8 + $0x24] ss:$8 sps:$4 sm:$0xff]   ;;  %v3024_v55 = vld [vmem:[#allocation7 + $0x20] ss:$8 sps:$4 sm:$0xff]  }
 0x1d3   : > { %2446 = vmatprep.subr.bf16.mxu1 %v708_v56  ;;  %v3027_v56 = vld [vmem:[#allocation8 + $0x20] ss:$8 sps:$4 sm:$0xff]  }
 0x1d4   : > { %2447 = vmatpush3.bf16.msra.mxu1 %v700_v7  ;;  %2558 = vmatprep.subr.bf16.mxu0 %v1077_v57  ;;  %v3028_v57 = vld [vmem:[#allocation7 + $0x34] ss:$8 sps:$4 sm:$0xff]  }
 0x1d5   : > { %2559 = vmatpush3.bf16.msra.mxu0 %v1069_v9 }
 0x1d6   : > { %v599_v58 = vpop.f32.mrb[36].mxu0 }
 0x1d7   : > { %v601_v59 = vpop.f32.mrb[37].mxu0 }
 0x1d8   : > { %v603_v60 = vpop.f32.mrb[38].mxu0 }
 0x1d9   : > { %v709_v61 = vpack.c.bf16 %v603_v60, %v599_v58  ;;  %v605_v62 = vpop.f32.mrb[39].mxu0  ;;  %v3031_v58 = vld [vmem:[#allocation8 + $0x34] ss:$8 sps:$4 sm:$0xff]   ;;  %v3030_v60 = vld [vmem:[#allocation7 + $0x30] ss:$8 sps:$4 sm:$0xff]  }
 0x1da   : > { %v1078_v63 = vpack.c.bf16 %v605_v62, %v601_v59  ;;  %v3118_v59 = vld [vmem:[#allocation10 + $0x40] ss:$8 sps:$4 sm:$0xff]   ;;  %v3034_v62 = vld [vmem:[#allocation7 + $0x44] ss:$8 sps:$4 sm:$0xff]  }
 0x1db   : > { %2448 = vmatprep.subr.bf16.mxu1 %v709_v61  ;;  %v3033_v61 = vld [vmem:[#allocation8 + $0x30] ss:$8 sps:$4 sm:$0xff]  }
 0x1dc   : > { %2449 = vmatpush3.bf16.msra.mxu1 %v701_v13  ;;  %2560 = vmatprep.subr.bf16.mxu0 %v1078_v63  ;;  %v3037_v63 = vld [vmem:[#allocation8 + $0x44] ss:$8 sps:$4 sm:$0xff]  }
 0x1dd   : > { %2561 = vmatpush3.bf16.msra.mxu0 %v1070_v15 }
 0x1de   : > { %v609_v1 = vpop.f32.mrb[40].mxu0 }
 0x1df   : > { %v611_v3 = vpop.f32.mrb[41].mxu0 }
 0x1e0   : > { %v613_v4 = vpop.f32.mrb[42].mxu0 }
 0x1e1   : > { %v710_v5 = vpack.c.bf16 %v613_v4, %v609_v1  ;;  %v615_v6 = vpop.f32.mrb[43].mxu0  ;;  %v3036_v1 = vld [vmem:[#allocation7 + $0x40] ss:$8 sps:$4 sm:$0xff]   ;;  %v3040_v4 = vld [vmem:[#allocation7 + $0x54] ss:$8 sps:$4 sm:$0xff]  }
 0x1e2   : > { %v1079_v8 = vpack.c.bf16 %v615_v6, %v611_v3  ;;  %v3039_v3 = vld [vmem:[#allocation8 + $0x40] ss:$8 sps:$4 sm:$0xff]   ;;  %v3042_v6 = vld [vmem:[#allocation7 + $0x50] ss:$8 sps:$4 sm:$0xff]  }
 0x1e3   : > { %2450 = vmatprep.subr.bf16.mxu1 %v710_v5  ;;  %v3043_v5 = vld [vmem:[#allocation8 + $0x54] ss:$8 sps:$4 sm:$0xff]  }
 0x1e4   : > { %2451 = vmatpush3.bf16.msra.mxu1 %v702_v19  ;;  %2562 = vmatprep.subr.bf16.mxu0 %v1079_v8  ;;  %v3045_v8 = vld [vmem:[#allocation8 + $0x50] ss:$8 sps:$4 sm:$0xff]  }
 0x1e5   : > { %2563 = vmatpush3.bf16.msra.mxu0 %v1071_v21 }
 0x1e6   : > { %v619_v7 = vpop.f32.mrb[44].mxu0 }
 0x1e7   : > { %v621_v9 = vpop.f32.mrb[45].mxu0 }
 0x1e8   : > { %v623_v10 = vpop.f32.mrb[46].mxu0 }
 0x1e9   : > { %v711_v11 = vpack.c.bf16 %v623_v10, %v619_v7  ;;  %v625_v12 = vpop.f32.mrb[47].mxu0  ;;  %v3046_v7 = vld [vmem:[#allocation7 + $0x64] ss:$8 sps:$4 sm:$0xff]   ;;  %v3048_v10 = vld [vmem:[#allocation7 + $0x60] ss:$8 sps:$4 sm:$0xff]  }
 0x1ea   : > { %v1080_v14 = vpack.c.bf16 %v625_v12, %v621_v9  ;;  %v3049_v9 = vld [vmem:[#allocation8 + $0x64] ss:$8 sps:$4 sm:$0xff]   ;;  %v3052_v12 = vld [vmem:[#allocation7 + $0x74] ss:$8 sps:$4 sm:$0xff]  }
 0x1eb   : > { %2452 = vmatprep.subr.bf16.mxu1 %v711_v11  ;;  %v3051_v11 = vld [vmem:[#allocation8 + $0x60] ss:$8 sps:$4 sm:$0xff]  }
 0x1ec   : > { %2453 = vmatpush3.bf16.msra.mxu1 %v703_v25  ;;  %2564 = vmatprep.subr.bf16.mxu0 %v1080_v14  ;;  %v3055_v14 = vld [vmem:[#allocation8 + $0x74] ss:$8 sps:$4 sm:$0xff]  }
 0x1ed   : > { %2565 = vmatpush3.bf16.msra.mxu0 %v1072_v27 }
 0x1ee   : > { %v629_v13 = vpop.f32.mrb[48].mxu0 }
 0x1ef   : > { %v631_v15 = vpop.f32.mrb[49].mxu0 }
 0x1f0   : > { %v633_v16 = vpop.f32.mrb[50].mxu0 }
 0x1f1   : > { %v712_v17 = vpack.c.bf16 %v633_v16, %v629_v13  ;;  %v635_v18 = vpop.f32.mrb[51].mxu0  ;;  %v3054_v13 = vld [vmem:[#allocation7 + $0x70] ss:$8 sps:$4 sm:$0xff]   ;;  %v3058_v16 = vld [vmem:[#allocation7 + $0x84] ss:$8 sps:$4 sm:$0xff]  }
 0x1f2   : > { %v1081_v19 = vpack.c.bf16 %v635_v18, %v631_v15  ;;  %v3057_v15 = vld [vmem:[#allocation8 + $0x70] ss:$8 sps:$4 sm:$0xff]   ;;  %v3060_v18 = vld [vmem:[#allocation7 + $0x80] ss:$8 sps:$4 sm:$0xff]  }
 0x1f3   : > { %2454 = vmatprep.subr.bf16.mxu1 %v712_v17  ;;  %v3061_v17 = vld [vmem:[#allocation8 + $0x84] ss:$8 sps:$4 sm:$0xff]  }
 0x1f4   : > { %2455 = vmatpush3.bf16.msra.mxu1 %v704_v31  ;;  %2566 = vmatprep.subr.bf16.mxu0 %v1081_v19  ;;  %v3063_v19 = vld [vmem:[#allocation8 + $0x80] ss:$8 sps:$4 sm:$0xff]  }
 0x1f5   : > { %2567 = vmatpush3.bf16.msra.mxu0 %v1073_v33 }
 0x1f6   : > { %v639_v20 = vpop.f32.mrb[52].mxu0 }
 0x1f7   : > { %v641_v21 = vpop.f32.mrb[53].mxu0 }
 0x1f8   : > { %v643_v22 = vpop.f32.mrb[54].mxu0 }
 0x1f9   : > { %v713_v23 = vpack.c.bf16 %v643_v22, %v639_v20  ;;  %v645_v24 = vpop.f32.mrb[55].mxu0  ;;  %v3064_v20 = vld [vmem:[#allocation7 + $0x94] ss:$8 sps:$4 sm:$0xff]   ;;  %v3068_v22 = vld [vmem:[#allocation7 + $0x90] ss:$8 sps:$4 sm:$0xff]  }
 0x1fa   : > { %v1082_v25 = vpack.c.bf16 %v645_v24, %v641_v21  ;;  %v3066_v21 = vld [vmem:[#allocation8 + $0x94] ss:$8 sps:$4 sm:$0xff]   ;;  %v3070_v24 = vld [vmem:[#allocation7 + $0xa4] ss:$8 sps:$4 sm:$0xff]  }
 0x1fb   : > { %2456 = vmatprep.subr.bf16.mxu1 %v713_v23  ;;  %v3069_v23 = vld [vmem:[#allocation8 + $0x90] ss:$8 sps:$4 sm:$0xff]  }
 0x1fc   : > { %2457 = vmatpush3.bf16.msra.mxu1 %v705_v37  ;;  %2568 = vmatprep.subr.bf16.mxu0 %v1082_v25  ;;  %v3108_v37 = vld [vmem:[#allocation10 + $0x4] ss:$8 sps:$4 sm:$0xff]  }
 0x1fd   : > { %2569 = vmatpush3.bf16.msra.mxu0 %v1074_v39  ;;  %v3010_v39 = vld [vmem:[#allocation7] ss:$8 sps:$4 sm:$0xff]   ;;  %v3072_v25 = vld [vmem:[#allocation8 + $0xa4] ss:$8 sps:$4 sm:$0xff]  }
 0x1fe   : > { %v649_v26 = vpop.f32.mrb[56].mxu0 }
 0x1ff   : > { %v651_v27 = vpop.f32.mrb[57].mxu0 }
 0x200   : > { %v653_v28 = vpop.f32.mrb[58].mxu0 }
 0x201   : > { %v714_v29 = vpack.c.bf16 %v653_v28, %v649_v26  ;;  %v655_v30 = vpop.f32.mrb[59].mxu0  ;;  %v3074_v26 = vld [vmem:[#allocation7 + $0xa0] ss:$8 sps:$4 sm:$0xff]   ;;  %v3076_v28 = vld [vmem:[#allocation7 + $0xb4] ss:$8 sps:$4 sm:$0xff]  }
 0x202   : > { %v1083_v31 = vpack.c.bf16 %v655_v30, %v651_v27  ;;  %v3075_v27 = vld [vmem:[#allocation8 + $0xa0] ss:$8 sps:$4 sm:$0xff]   ;;  %v3123_v30 = vld [vmem:[#allocation10 + $0x54] ss:$8 sps:$4 sm:$0xff]  }
 0x203   : > { %2458 = vmatprep.subr.bf16.mxu1 %v714_v29  ;;  %v3078_v29 = vld [vmem:[#allocation8 + $0xb4] ss:$8 sps:$4 sm:$0xff]  }
 0x204   : > { %2459 = vmatpush3.bf16.msra.mxu1 %v706_v43  ;;  %2570 = vmatprep.subr.bf16.mxu0 %v1083_v31  ;;  %v3106_v43 = vld [vmem:[#allocation10] ss:$8 sps:$4 sm:$0xff]   ;;  %v3121_v31 = vld [vmem:[#allocation10 + $0x50] ss:$8 sps:$4 sm:$0xff]  }
 0x205   : > { %2571 = vmatpush3.bf16.msra.mxu0 %v1075_v45  ;;  %v3109_v45 = vld [vmem:[#allocation10 + $0x10] ss:$8 sps:$4 sm:$0xff]  }
 0x206   : > { %v659_v32 = vpop.f32.mrb[60].mxu0 }
 0x207   : > { %v661_v33 = vpop.f32.mrb[61].mxu0 }
 0x208   : > { %v663_v34 = vpop.f32.mrb[62].mxu0 }
 0x209   : > { %v715_v35 = vpack.c.bf16 %v663_v34, %v659_v32  ;;  %v665_v36 = vpop.f32.mrb[63].mxu0  ;;  %v3080_v32 = vld [vmem:[#allocation7 + $0xb0] ss:$8 sps:$4 sm:$0xff]   ;;  %v3082_v34 = vld [vmem:[#allocation7 + $0xc4] ss:$8 sps:$4 sm:$0xff]  }
 0x20a   : > { %v1084_v38 = vpack.c.bf16 %v665_v36, %v661_v33  ;;  %v3081_v33 = vld [vmem:[#allocation8 + $0xb0] ss:$8 sps:$4 sm:$0xff]   ;;  %v3126_v36 = vld [vmem:[#allocation10 + $0x64] ss:$8 sps:$4 sm:$0xff]  }
 0x20b   : > { %2460 = vmatprep.subr.bf16.mxu1 %v715_v35  ;;  %v3084_v35 = vld [vmem:[#allocation8 + $0xc4] ss:$8 sps:$4 sm:$0xff]  }
 0x20c   : > { %2461 = vmatpush3.bf16.msra.mxu1 %v707_v49  ;;  %2572 = vmatprep.subr.bf16.mxu0 %v1084_v38  ;;  %v3021_v49 = vld [vmem:[#allocation8 + $0x10] ss:$8 sps:$4 sm:$0xff]   ;;  %v3129_v38 = vld [vmem:[#allocation10 + $0x74] ss:$8 sps:$4 sm:$0xff]  }
 0x20d   : > { %2573 = vmatpush3.bf16.msra.mxu0 %v1076_v51  ;;  %1589 = vmatprep.subr.bf16.mxu1 %v3108_v37  ;;  %v3120_v51 = vld [vmem:[#allocation10 + $0x44] ss:$8 sps:$4 sm:$0xff]   ;;  %v3124_v37 = vld [vmem:[#allocation10 + $0x60] ss:$8 sps:$4 sm:$0xff]  }
 0x20f   : > { %909 = vmatmul.mubr.bf16.vlgmr.msra.gmra.mrb[0].mxu1 %v3010_v39  ;;  %v3127_v39 = vld [vmem:[#allocation10 + $0x70] ss:$8 sps:$4 sm:$0xff]  }
 0x210   : > { %1278 = vmatmul.mubr.bf16.vlgmr.msra.gmra.mrb[64].mxu0 %v3013_v40  ;;  %916 = vmatprep.mubr.bf16.mxu1 %v3016_v42  ;;  %v3086_v40 = vld [vmem:[#allocation7 + $0xc0] ss:$8 sps:$4 sm:$0xff]  }
 0x211   : > { %1285 = vmatprep.mubr.bf16.mxu0 %v3019_v41  ;;  %1590 = vmatpush1.bf16.msra.mxu1 %v3106_v43  ;;  %v3087_v42 = vld [vmem:[#allocation8 + $0xc0] ss:$8 sps:$4 sm:$0xff]   ;;  %v3088_v41 = vld [vmem:[#allocation7 + $0xd4] ss:$8 sps:$4 sm:$0xff]  }
 0x212   : > { %1591 = vmatprep.subr.bf16.mxu1 %v3111_v44  ;;  %v3090_v43 = vld [vmem:[#allocation8 + $0xd4] ss:$8 sps:$4 sm:$0xff]   ;;  %v3840_v44 = vld [vmem:[#allocation7 + $0xd0] ss:$8 sps:$4 sm:$0xff]  }
 0x215   : > { %1592 = vmatpush1.bf16.msra.mxu1 %v3109_v45  ;;  %v3842_v45 = vld [vmem:[#allocation8 + $0xd0] ss:$8 sps:$4 sm:$0xff]  }
 0x216   : > { %1593 = vmatprep.subr.bf16.mxu1 %v3114_v46  ;;  %v3844_v46 = vld [vmem:[#allocation7 + $0xe4] ss:$8 sps:$4 sm:$0xff]  }
 0x217   : > { %917 = vmatmul.mubr.bf16.gmra.mrb[4].mxu1 %v3018_v48  ;;  %v3846_v48 = vld [vmem:[#allocation8 + $0xe4] ss:$8 sps:$4 sm:$0xff]  }
 0x218   : > { %1286 = vmatmul.mubr.bf16.gmra.mrb[68].mxu0 %v3021_v49  ;;  %924 = vmatprep.mubr.bf16.mxu1 %v3022_v52  ;;  %v3852_v49 = vld [vmem:[#allocation7 + $0xe0] ss:$8 sps:$4 sm:$0xff]  }
 0x219   : > { %1293 = vmatprep.mubr.bf16.mxu0 %v3025_v53  ;;  %1594 = vmatpush1.bf16.msra.mxu1 %v3112_v54  ;;  %v3854_v52 = vld [vmem:[#allocation8 + $0xe0] ss:$8 sps:$4 sm:$0xff]   ;;  %v3856_v53 = vld [vmem:[#allocation7 + $0xf4] ss:$8 sps:$4 sm:$0xff]  }
 0x21a   : > { %1595 = vmatprep.subr.bf16.mxu1 %v3117_v47  ;;  %v3858_v54 = vld [vmem:[#allocation8 + $0xf4] ss:$8 sps:$4 sm:$0xff]   ;;  %v3864_v47 = vld [vmem:[#allocation7 + $0xf0] ss:$8 sps:$4 sm:$0xff]  }
 0x21d   : > { %1596 = vmatpush1.bf16.msra.mxu1 %v3115_v50  ;;  %v3866_v50 = vld [vmem:[#allocation8 + $0xf0] ss:$8 sps:$4 sm:$0xff]  }
 0x21e   : > { %1597 = vmatprep.subr.bf16.mxu1 %v3120_v51 }
 0x21f   : > { %925 = vmatmul.mubr.bf16.gmra.mrb[8].mxu1 %v3024_v55 }
 0x220   : > { %1294 = vmatmul.mubr.bf16.gmra.mrb[72].mxu0 %v3027_v56  ;;  %932 = vmatprep.mubr.bf16.mxu1 %v3028_v57 }
 0x221   : > { %1301 = vmatprep.mubr.bf16.mxu0 %v3031_v58  ;;  %1598 = vmatpush1.bf16.msra.mxu1 %v3118_v59 }
 0x222   : > { %1599 = vmatprep.subr.bf16.mxu1 %v3123_v30 }
 0x225   : > { %1600 = vmatpush1.bf16.msra.mxu1 %v3121_v31 }
 0x226   : > { %1601 = vmatprep.subr.bf16.mxu1 %v3126_v36 }
 0x227   : > { %933 = vmatmul.mubr.bf16.gmra.mrb[12].mxu1 %v3030_v60 }
 0x228   : > { %1302 = vmatmul.mubr.bf16.gmra.mrb[76].mxu0 %v3033_v61  ;;  %940 = vmatprep.mubr.bf16.mxu1 %v3034_v62 }
 0x229   : > { %1309 = vmatprep.mubr.bf16.mxu0 %v3037_v63  ;;  %1602 = vmatpush1.bf16.msra.mxu1 %v3124_v37 }
 0x22a   : > { %1603 = vmatprep.subr.bf16.mxu1 %v3129_v38 }
 0x22d   : > { %1604 = vmatpush1.bf16.msra.mxu1 %v3127_v39 }
 0x22f   : > { %941 = vmatmul.mubr.bf16.gmra.mrb[16].mxu1 %v3036_v1 }
 0x230   : > { %1310 = vmatmul.mubr.bf16.gmra.mrb[80].mxu0 %v3039_v3  ;;  %948 = vmatprep.mubr.bf16.mxu1 %v3040_v4 }
 0x231   : > { %1317 = vmatprep.mubr.bf16.mxu0 %v3043_v5  ;;  %v3875_v5 = vld [vmem:[%s4121_s4] ss:$0 sm:$0xff] }
 0x237   : > { %949 = vmatmul.mubr.bf16.gmra.mrb[20].mxu1 %v3042_v6 }
 0x238   : > { %1318 = vmatmul.mubr.bf16.gmra.mrb[84].mxu0 %v3045_v8  ;;  %956 = vmatprep.mubr.bf16.mxu1 %v3046_v7 }
 0x239   : > { %1325 = vmatprep.mubr.bf16.mxu0 %v3049_v9 }
 0x23f   : > { %957 = vmatmul.mubr.bf16.gmra.mrb[24].mxu1 %v3048_v10 }
 0x240   : > { %1326 = vmatmul.mubr.bf16.gmra.mrb[88].mxu0 %v3051_v11  ;;  %964 = vmatprep.mubr.bf16.mxu1 %v3052_v12 }
 0x241   : > { %1333 = vmatprep.mubr.bf16.mxu0 %v3055_v14 }
 0x247   : > { %965 = vmatmul.mubr.bf16.gmra.mrb[28].mxu1 %v3054_v13 }
 0x248   : > { %1334 = vmatmul.mubr.bf16.gmra.mrb[92].mxu0 %v3057_v15  ;;  %972 = vmatprep.mubr.bf16.mxu1 %v3058_v16 }
 0x249   : > { %1341 = vmatprep.mubr.bf16.mxu0 %v3061_v17 }
 0x24f   : > { %973 = vmatmul.mubr.bf16.gmra.mrb[32].mxu1 %v3060_v18 }
 0x250   : > { %1342 = vmatmul.mubr.bf16.gmra.mrb[96].mxu0 %v3063_v19  ;;  %980 = vmatprep.mubr.bf16.mxu1 %v3064_v20 }
 0x251   : > { %1349 = vmatprep.mubr.bf16.mxu0 %v3066_v21 }
 0x257   : > { %981 = vmatmul.mubr.bf16.gmra.mrb[36].mxu1 %v3068_v22 }
 0x258   : > { %1350 = vmatmul.mubr.bf16.gmra.mrb[100].mxu0 %v3069_v23  ;;  %988 = vmatprep.mubr.bf16.mxu1 %v3070_v24 }
 0x259   : > { %1357 = vmatprep.mubr.bf16.mxu0 %v3072_v25 }
 0x25f   : > { %989 = vmatmul.mubr.bf16.gmra.mrb[40].mxu1 %v3074_v26 }
 0x260   : > { %1358 = vmatmul.mubr.bf16.gmra.mrb[104].mxu0 %v3075_v27  ;;  %996 = vmatprep.mubr.bf16.mxu1 %v3076_v28 }
 0x261   : > { %1365 = vmatprep.mubr.bf16.mxu0 %v3078_v29 }
 0x267   : > { %997 = vmatmul.mubr.bf16.gmra.mrb[44].mxu1 %v3080_v32 }
 0x268   : > { %1366 = vmatmul.mubr.bf16.gmra.mrb[108].mxu0 %v3081_v33  ;;  %1004 = vmatprep.mubr.bf16.mxu1 %v3082_v34 }
 0x269   : > { %1373 = vmatprep.mubr.bf16.mxu0 %v3084_v35 }
 0x26f   : > { %1005 = vmatmul.mubr.bf16.gmra.mrb[48].mxu1 %v3086_v40 }
 0x270   : > { %1374 = vmatmul.mubr.bf16.gmra.mrb[112].mxu0 %v3087_v42  ;;  %1012 = vmatprep.mubr.bf16.mxu1 %v3088_v41 }
 0x271   : > { %1381 = vmatprep.mubr.bf16.mxu0 %v3090_v43 }
 0x277   : > { %1013 = vmatmul.mubr.bf16.gmra.mrb[52].mxu1 %v3840_v44 }
 0x278   : > { %1382 = vmatmul.mubr.bf16.gmra.mrb[116].mxu0 %v3842_v45  ;;  %1020 = vmatprep.mubr.bf16.mxu1 %v3844_v46 }
 0x279   : > { %1389 = vmatprep.mubr.bf16.mxu0 %v3846_v48 }
 0x27f   : > { %1021 = vmatmul.mubr.bf16.gmra.mrb[56].mxu1 %v3852_v49 }
 0x280   : > { %1390 = vmatmul.mubr.bf16.gmra.mrb[120].mxu0 %v3854_v52  ;;  %1028 = vmatprep.mubr.bf16.mxu1 %v3856_v53 }
 0x281   : > { %1397 = vmatprep.mubr.bf16.mxu0 %v3858_v54 }
 0x287   : > { %1029 = vmatmul.mubr.bf16.gmra.mrb[60].mxu1 %v3864_v47 }
 0x288   : > { %1398 = vmatmul.mubr.bf16.gmra.mrb[124].mxu0 %v3866_v50  ;;  %1621 = vmatprep.mubr.bf16.mxu1 %v3408_v0 }
 0x289   : > { %1830 = vmatprep.mubr.bf16.mxu0 %v3741_v2 }
 0x2e2   : > { %v2462_v51 = vpop.f32.mrb[0].mxu1 }
 0x2e3   : > { %v2463_v55 = vpop.f32.mrb[1].mxu1  ;;  %v2574_v56 = vpop.f32.mrb[64].mxu0 }
 0x2e4   : > { %v2464_v57 = vadd.f32 %v2463_v55, %v2462_v51  ;;  %v2465_v58 = vpop.f32.mrb[2].mxu1  ;;  %v2575_v59 = vpop.f32.mrb[65].mxu0 }
 0x2e5   : > { %v2576_v60 = vadd.f32 %v2575_v59, %v2574_v56  ;;  %v2466_v61 = vpop.f32.mrb[3].mxu1  ;;  %v2577_v62 = vpop.f32.mrb[66].mxu0 }
 0x2e6   : > { %v2467_v63 = vadd.f32 %v2466_v61, %v2465_v58  ;;  %v2578_v1 = vpop.f32.mrb[67].mxu0 }
 0x2e7   : > { %v1406_v3 = vsub.f32 %v2464_v57, %v2576_v60  ;;  %v2579_v4 = vadd.f32 %v2578_v1, %v2577_v62 }
 0x2e9   : > { %v1407_v6 = vsub.f32 %v2467_v63, %v2579_v4  ;;  %v1445_v8 = vadd.f32 %v3875_v5, %v1406_v3 }
 0x2ea   : > { %v2468_v2 = vpop.f32.mrb[4].mxu1 }
 0x2eb   : > { %v1446_v7 = vadd.f32 %v3875_v5, %v1407_v6  ;;  %v2469_v9 = vpop.f32.mrb[5].mxu1  ;;  %v2580_v10 = vpop.f32.mrb[68].mxu0 }
 0x2ec   : > { %v2470_v11 = vadd.f32 %v2469_v9, %v2468_v2  ;;  %v2471_v12 = vpop.f32.mrb[6].mxu1  ;;  %v2581_v14 = vpop.f32.mrb[69].mxu0 }
 0x2ed   : > { %v1477_v13 = vpack.c.bf16 %v1446_v7, %v1445_v8  ;;  %v2582_v15 = vadd.f32 %v2581_v14, %v2580_v10  ;;  %v2472_v16 = vpop.f32.mrb[7].mxu1  ;;  %v2583_v17 = vpop.f32.mrb[70].mxu0 }
 0x2ee   : > { %v2473_v18 = vadd.f32 %v2472_v16, %v2471_v12  ;;  %v2584_v19 = vpop.f32.mrb[71].mxu0 }
 0x2ef   : > { %v1408_v20 = vsub.f32 %v2470_v11, %v2582_v15  ;;  %v2585_v21 = vadd.f32 %v2584_v19, %v2583_v17  ;;  %1622 = vmatmul.mubr.bf16.vlgmr.msra.gmra.mrb[64].mxu1 %v1477_v13 }
 0x2f0   : > { %1631 = vmatprep.mubr.bf16.mxu1 %v3408_v0 }
 0x2f1   : > { %v1409_v22 = vsub.f32 %v2473_v18, %v2585_v21  ;;  %v1447_v24 = vadd.f32 %v3875_v5, %v1408_v20 }
 0x2f2   : > { %v2474_v23 = vpop.f32.mrb[8].mxu1 }
 0x2f3   : > { %v1448_v25 = vadd.f32 %v3875_v5, %v1409_v22  ;;  %v2475_v26 = vpop.f32.mrb[9].mxu1  ;;  %v2586_v27 = vpop.f32.mrb[72].mxu0 }
 0x2f4   : > { %v2476_v28 = vadd.f32 %v2475_v26, %v2474_v23  ;;  %v2477_v29 = vpop.f32.mrb[10].mxu1  ;;  %v2587_v30 = vpop.f32.mrb[73].mxu0 }
 0x2f5   : > { %v2588_v31 = vadd.f32 %v2587_v30, %v2586_v27  ;;  %v2478_v32 = vpop.f32.mrb[11].mxu1  ;;  %v2589_v33 = vpop.f32.mrb[74].mxu0  ;;  %v1478_v34 = vpack.c.bf16 %v1448_v25, %v1447_v24 }
 0x2f6   : > { %v2479_v35 = vadd.f32 %v2478_v32, %v2477_v29  ;;  %v2590_v36 = vpop.f32.mrb[75].mxu0 }
 0x2f7   : > { %v1410_v37 = vsub.f32 %v2476_v28, %v2588_v31  ;;  %v2591_v38 = vadd.f32 %v2590_v36, %v2589_v33  ;;  %1632 = vmatmul.mubr.bf16.gmra.mrb[68].mxu1 %v1478_v34 }
 0x2f8   : > { %1641 = vmatprep.mubr.bf16.mxu1 %v3408_v0 }
 0x2f9   : > { %v1411_v39 = vsub.f32 %v2479_v35, %v2591_v38  ;;  %v1449_v42 = vadd.f32 %v3875_v5, %v1410_v37 }
 0x2fa   : > { %v2480_v40 = vpop.f32.mrb[12].mxu1 }
 0x2fb   : > { %v1450_v41 = vadd.f32 %v3875_v5, %v1411_v39  ;;  %v2481_v43 = vpop.f32.mrb[13].mxu1  ;;  %v2592_v51 = vpop.f32.mrb[76].mxu0 }
 0x2fc   : > { %v2482_v55 = vadd.f32 %v2481_v43, %v2480_v40  ;;  %v2483_v56 = vpop.f32.mrb[14].mxu1  ;;  %v2593_v57 = vpop.f32.mrb[77].mxu0 }
 0x2fd   : > { %v2594_v58 = vadd.f32 %v2593_v57, %v2592_v51  ;;  %v2484_v59 = vpop.f32.mrb[15].mxu1  ;;  %v2595_v60 = vpop.f32.mrb[78].mxu0  ;;  %v1479_v61 = vpack.c.bf16 %v1450_v41, %v1449_v42 }
 0x2fe   : > { %v2485_v62 = vadd.f32 %v2484_v59, %v2483_v56  ;;  %v2596_v63 = vpop.f32.mrb[79].mxu0 }
 0x2ff   : > { %v1412_v1 = vsub.f32 %v2482_v55, %v2594_v58  ;;  %v2597_v3 = vadd.f32 %v2596_v63, %v2595_v60  ;;  %1642 = vmatmul.mubr.bf16.gmra.mrb[72].mxu1 %v1479_v61 }
 0x300   : > { %1651 = vmatprep.mubr.bf16.mxu1 %v3408_v0 }
 0x301   : > { %v1413_v4 = vsub.f32 %v2485_v62, %v2597_v3  ;;  %v1451_v2 = vadd.f32 %v3875_v5, %v1412_v1 }
 0x302   : > { %v2486_v6 = vpop.f32.mrb[16].mxu1 }
 0x303   : > { %v1452_v8 = vadd.f32 %v3875_v5, %v1413_v4  ;;  %v2487_v7 = vpop.f32.mrb[17].mxu1  ;;  %v2598_v9 = vpop.f32.mrb[80].mxu0 }
 0x304   : > { %v2488_v10 = vadd.f32 %v2487_v7, %v2486_v6  ;;  %v2489_v11 = vpop.f32.mrb[18].mxu1  ;;  %v2599_v12 = vpop.f32.mrb[81].mxu0 }
 0x305   : > { %v2600_v14 = vadd.f32 %v2599_v12, %v2598_v9  ;;  %v2490_v13 = vpop.f32.mrb[19].mxu1  ;;  %v2601_v15 = vpop.f32.mrb[82].mxu0  ;;  %v1480_v16 = vpack.c.bf16 %v1452_v8, %v1451_v2 }
 0x306   : > { %v2491_v17 = vadd.f32 %v2490_v13, %v2489_v11  ;;  %v2602_v18 = vpop.f32.mrb[83].mxu0 }
 0x307   : > { %v1414_v19 = vsub.f32 %v2488_v10, %v2600_v14  ;;  %v2603_v20 = vadd.f32 %v2602_v18, %v2601_v15  ;;  %1652 = vmatmul.mubr.bf16.gmra.mrb[76].mxu1 %v1480_v16 }
 0x308   : > { %1661 = vmatprep.mubr.bf16.mxu1 %v3408_v0 }
 0x309   : > { %v1415_v21 = vsub.f32 %v2491_v17, %v2603_v20  ;;  %v1453_v23 = vadd.f32 %v3875_v5, %v1414_v19 }
 0x30a   : > { %v2492_v22 = vpop.f32.mrb[20].mxu1 }
 0x30b   : > { %v1454_v24 = vadd.f32 %v3875_v5, %v1415_v21  ;;  %v2493_v25 = vpop.f32.mrb[21].mxu1  ;;  %v2604_v26 = vpop.f32.mrb[84].mxu0 }
 0x30c   : > { %v2494_v27 = vadd.f32 %v2493_v25, %v2492_v22  ;;  %v2495_v28 = vpop.f32.mrb[22].mxu1  ;;  %v2605_v29 = vpop.f32.mrb[85].mxu0 }
 0x30d   : > { %v2606_v30 = vadd.f32 %v2605_v29, %v2604_v26  ;;  %v2496_v31 = vpop.f32.mrb[23].mxu1  ;;  %v2607_v32 = vpop.f32.mrb[86].mxu0  ;;  %v1481_v33 = vpack.c.bf16 %v1454_v24, %v1453_v23 }
 0x30e   : > { %v2497_v34 = vadd.f32 %v2496_v31, %v2495_v28  ;;  %v2608_v35 = vpop.f32.mrb[87].mxu0 }
 0x30f   : > { %v1416_v36 = vsub.f32 %v2494_v27, %v2606_v30  ;;  %v2609_v37 = vadd.f32 %v2608_v35, %v2607_v32  ;;  %1662 = vmatmul.mubr.bf16.gmra.mrb[80].mxu1 %v1481_v33 }
 0x310   : > { %1671 = vmatprep.mubr.bf16.mxu1 %v3408_v0 }
 0x311   : > { %v1417_v38 = vsub.f32 %v2497_v34, %v2609_v37  ;;  %v1455_v40 = vadd.f32 %v3875_v5, %v1416_v36 }
 0x312   : > { %v2498_v39 = vpop.f32.mrb[24].mxu1 }
 0x313   : > { %v1456_v42 = vadd.f32 %v3875_v5, %v1417_v38  ;;  %v2499_v41 = vpop.f32.mrb[25].mxu1  ;;  %v2610_v43 = vpop.f32.mrb[88].mxu0 }
 0x314   : > { %v2500_v51 = vadd.f32 %v2499_v41, %v2498_v39  ;;  %v2501_v55 = vpop.f32.mrb[26].mxu1  ;;  %v2611_v56 = vpop.f32.mrb[89].mxu0 }
 0x315   : > { %v2612_v57 = vadd.f32 %v2611_v56, %v2610_v43  ;;  %v2502_v58 = vpop.f32.mrb[27].mxu1  ;;  %v2613_v59 = vpop.f32.mrb[90].mxu0  ;;  %v1482_v60 = vpack.c.bf16 %v1456_v42, %v1455_v40 }
 0x316   : > { %v2503_v61 = vadd.f32 %v2502_v58, %v2501_v55  ;;  %v2614_v62 = vpop.f32.mrb[91].mxu0 }
 0x317   : > { %v1418_v63 = vsub.f32 %v2500_v51, %v2612_v57  ;;  %v2615_v1 = vadd.f32 %v2614_v62, %v2613_v59  ;;  %1672 = vmatmul.mubr.bf16.gmra.mrb[84].mxu1 %v1482_v60 }
 0x318   : > { %1681 = vmatprep.mubr.bf16.mxu1 %v3408_v0 }
 0x319   : > { %v1419_v3 = vsub.f32 %v2503_v61, %v2615_v1  ;;  %v1457_v6 = vadd.f32 %v3875_v5, %v1418_v63 }
 0x31a   : > { %v2504_v4 = vpop.f32.mrb[28].mxu1 }
 0x31b   : > { %v1458_v2 = vadd.f32 %v3875_v5, %v1419_v3  ;;  %v2505_v8 = vpop.f32.mrb[29].mxu1  ;;  %v2616_v7 = vpop.f32.mrb[92].mxu0 }
 0x31c   : > { %v2506_v9 = vadd.f32 %v2505_v8, %v2504_v4  ;;  %v2507_v10 = vpop.f32.mrb[30].mxu1  ;;  %v2617_v11 = vpop.f32.mrb[93].mxu0 }
 0x31d   : > { %v2618_v12 = vadd.f32 %v2617_v11, %v2616_v7  ;;  %v2508_v14 = vpop.f32.mrb[31].mxu1  ;;  %v2619_v13 = vpop.f32.mrb[94].mxu0  ;;  %v1483_v15 = vpack.c.bf16 %v1458_v2, %v1457_v6 }
 0x31e   : > { %v2509_v16 = vadd.f32 %v2508_v14, %v2507_v10  ;;  %v2620_v17 = vpop.f32.mrb[95].mxu0 }
 0x31f   : > { %v1420_v18 = vsub.f32 %v2506_v9, %v2618_v12  ;;  %v2621_v19 = vadd.f32 %v2620_v17, %v2619_v13  ;;  %1682 = vmatmul.mubr.bf16.gmra.mrb[88].mxu1 %v1483_v15 }
 0x320   : > { %1691 = vmatprep.mubr.bf16.mxu1 %v3408_v0 }
 0x321   : > { %v1421_v20 = vsub.f32 %v2509_v16, %v2621_v19  ;;  %v1459_v22 = vadd.f32 %v3875_v5, %v1420_v18 }
 0x322   : > { %v2510_v21 = vpop.f32.mrb[32].mxu1 }
 0x323   : > { %v1460_v23 = vadd.f32 %v3875_v5, %v1421_v20  ;;  %v2511_v24 = vpop.f32.mrb[33].mxu1  ;;  %v2622_v25 = vpop.f32.mrb[96].mxu0 }
 0x324   : > { %v2512_v26 = vadd.f32 %v2511_v24, %v2510_v21  ;;  %v2513_v27 = vpop.f32.mrb[34].mxu1  ;;  %v2623_v28 = vpop.f32.mrb[97].mxu0 }
 0x325   : > { %v2624_v29 = vadd.f32 %v2623_v28, %v2622_v25  ;;  %v2514_v30 = vpop.f32.mrb[35].mxu1  ;;  %v2625_v31 = vpop.f32.mrb[98].mxu0  ;;  %v1484_v32 = vpack.c.bf16 %v1460_v23, %v1459_v22 }
 0x326   : > { %v2515_v33 = vadd.f32 %v2514_v30, %v2513_v27  ;;  %v2626_v34 = vpop.f32.mrb[99].mxu0 }
 0x327   : > { %v1422_v35 = vsub.f32 %v2512_v26, %v2624_v29  ;;  %v2627_v36 = vadd.f32 %v2626_v34, %v2625_v31  ;;  %1692 = vmatmul.mubr.bf16.gmra.mrb[92].mxu1 %v1484_v32 }
 0x328   : > { %1701 = vmatprep.mubr.bf16.mxu1 %v3408_v0 }
 0x329   : > { %v1423_v37 = vsub.f32 %v2515_v33, %v2627_v36  ;;  %v1461_v39 = vadd.f32 %v3875_v5, %v1422_v35 }
 0x32a   : > { %v2516_v38 = vpop.f32.mrb[36].mxu1 }
 0x32b   : > { %v1462_v40 = vadd.f32 %v3875_v5, %v1423_v37  ;;  %v2628_v42 = vpop.f32.mrb[100].mxu0  ;;  %v2517_v41 = vpop.f32.mrb[37].mxu1 }
 0x32c   : > { %v2518_v43 = vadd.f32 %v2517_v41, %v2516_v38  ;;  %v2629_v51 = vpop.f32.mrb[101].mxu0  ;;  %v2519_v55 = vpop.f32.mrb[38].mxu1 }
 0x32d   : > { %v2630_v56 = vadd.f32 %v2629_v51, %v2628_v42  ;;  %v2631_v57 = vpop.f32.mrb[102].mxu0  ;;  %v2520_v58 = vpop.f32.mrb[39].mxu1  ;;  %v1485_v59 = vpack.c.bf16 %v1462_v40, %v1461_v39 }
 0x32e   : > { %v2521_v60 = vadd.f32 %v2520_v58, %v2519_v55  ;;  %v2632_v61 = vpop.f32.mrb[103].mxu0 }
 0x32f   : > { %v1424_v62 = vsub.f32 %v2518_v43, %v2630_v56  ;;  %v2633_v63 = vadd.f32 %v2632_v61, %v2631_v57  ;;  %1702 = vmatmul.mubr.bf16.gmra.mrb[96].mxu1 %v1485_v59 }
 0x330   : > { %1711 = vmatprep.mubr.bf16.mxu1 %v3408_v0 }
 0x331   : > { %v1425_v1 = vsub.f32 %v2521_v60, %v2633_v63  ;;  %v1463_v4 = vadd.f32 %v3875_v5, %v1424_v62 }
 0x332   : > { %v2522_v3 = vpop.f32.mrb[40].mxu1 }
 0x333   : > { %v1464_v6 = vadd.f32 %v3875_v5, %v1425_v1  ;;  %v2634_v2 = vpop.f32.mrb[104].mxu0  ;;  %v2523_v8 = vpop.f32.mrb[41].mxu1 }
 0x334   : > { %v2524_v7 = vadd.f32 %v2523_v8, %v2522_v3  ;;  %v2635_v9 = vpop.f32.mrb[105].mxu0  ;;  %v2525_v10 = vpop.f32.mrb[42].mxu1 }
 0x335   : > { %v2636_v11 = vadd.f32 %v2635_v9, %v2634_v2  ;;  %v2637_v12 = vpop.f32.mrb[106].mxu0  ;;  %v2526_v14 = vpop.f32.mrb[43].mxu1  ;;  %v1486_v13 = vpack.c.bf16 %v1464_v6, %v1463_v4 }
 0x336   : > { %v2527_v15 = vadd.f32 %v2526_v14, %v2525_v10  ;;  %v2638_v16 = vpop.f32.mrb[107].mxu0 }
 0x337   : > { %v1426_v17 = vsub.f32 %v2524_v7, %v2636_v11  ;;  %v2639_v18 = vadd.f32 %v2638_v16, %v2637_v12  ;;  %1712 = vmatmul.mubr.bf16.gmra.mrb[100].mxu1 %v1486_v13 }
 0x338   : > { %1721 = vmatprep.mubr.bf16.mxu1 %v3408_v0 }
 0x339   : > { %v1427_v19 = vsub.f32 %v2527_v15, %v2639_v18  ;;  %v1465_v21 = vadd.f32 %v3875_v5, %v1426_v17 }
 0x33a   : > { %v2528_v20 = vpop.f32.mrb[44].mxu1 }
 0x33b   : > { %v1466_v22 = vadd.f32 %v3875_v5, %v1427_v19  ;;  %v2640_v23 = vpop.f32.mrb[108].mxu0  ;;  %v2529_v24 = vpop.f32.mrb[45].mxu1 }
 0x33c   : > { %v2530_v25 = vadd.f32 %v2529_v24, %v2528_v20  ;;  %v2641_v26 = vpop.f32.mrb[109].mxu0  ;;  %v2531_v27 = vpop.f32.mrb[46].mxu1 }
 0x33d   : > { %v2642_v28 = vadd.f32 %v2641_v26, %v2640_v23  ;;  %v2643_v29 = vpop.f32.mrb[110].mxu0  ;;  %v2532_v30 = vpop.f32.mrb[47].mxu1  ;;  %v1487_v31 = vpack.c.bf16 %v1466_v22, %v1465_v21 }
 0x33e   : > { %v2533_v32 = vadd.f32 %v2532_v30, %v2531_v27  ;;  %v2644_v33 = vpop.f32.mrb[111].mxu0 }
 0x33f   : > { %v1428_v34 = vsub.f32 %v2530_v25, %v2642_v28  ;;  %v2645_v35 = vadd.f32 %v2644_v33, %v2643_v29  ;;  %1722 = vmatmul.mubr.bf16.gmra.mrb[104].mxu1 %v1487_v31 }
 0x340   : > { %1731 = vmatprep.mubr.bf16.mxu1 %v3408_v0 }
 0x341   : > { %v1429_v36 = vsub.f32 %v2533_v32, %v2645_v35  ;;  %v1467_v38 = vadd.f32 %v3875_v5, %v1428_v34 }
 0x342   : > { %v2534_v37 = vpop.f32.mrb[48].mxu1 }
 0x343   : > { %v1468_v39 = vadd.f32 %v3875_v5, %v1429_v36  ;;  %v2646_v40 = vpop.f32.mrb[112].mxu0  ;;  %v2535_v42 = vpop.f32.mrb[49].mxu1 }
 0x344   : > { %v2536_v41 = vadd.f32 %v2535_v42, %v2534_v37  ;;  %v2647_v43 = vpop.f32.mrb[113].mxu0  ;;  %v2537_v51 = vpop.f32.mrb[50].mxu1 }
 0x345   : > { %v2648_v55 = vadd.f32 %v2647_v43, %v2646_v40  ;;  %v2649_v56 = vpop.f32.mrb[114].mxu0  ;;  %v2538_v57 = vpop.f32.mrb[51].mxu1  ;;  %v1488_v58 = vpack.c.bf16 %v1468_v39, %v1467_v38 }
 0x346   : > { %v2539_v59 = vadd.f32 %v2538_v57, %v2537_v51  ;;  %v2650_v60 = vpop.f32.mrb[115].mxu0 }
 0x347   : > { %v1430_v61 = vsub.f32 %v2536_v41, %v2648_v55  ;;  %v2651_v62 = vadd.f32 %v2650_v60, %v2649_v56  ;;  %1732 = vmatmul.mubr.bf16.gmra.mrb[108].mxu1 %v1488_v58 }
 0x348   : > { %1741 = vmatprep.mubr.bf16.mxu1 %v3408_v0 }
 0x349   : > { %v1431_v63 = vsub.f32 %v2539_v59, %v2651_v62  ;;  %v1469_v3 = vadd.f32 %v3875_v5, %v1430_v61 }
 0x34a   : > { %v2540_v1 = vpop.f32.mrb[52].mxu1 }
 0x34b   : > { %v1470_v4 = vadd.f32 %v3875_v5, %v1431_v63  ;;  %v2652_v6 = vpop.f32.mrb[116].mxu0  ;;  %v2541_v2 = vpop.f32.mrb[53].mxu1 }
 0x34c   : > { %v2542_v8 = vadd.f32 %v2541_v2, %v2540_v1  ;;  %v2653_v7 = vpop.f32.mrb[117].mxu0  ;;  %v2543_v9 = vpop.f32.mrb[54].mxu1 }
 0x34d   : > { %v2654_v10 = vadd.f32 %v2653_v7, %v2652_v6  ;;  %v2655_v11 = vpop.f32.mrb[118].mxu0  ;;  %v2544_v12 = vpop.f32.mrb[55].mxu1  ;;  %v1489_v14 = vpack.c.bf16 %v1470_v4, %v1469_v3  ;;  %v3130_v4 = vld [vmem:[#allocation8 + $0x4] ss:$8 sps:$4 sm:$0xff]  }
 0x34e   : > { %v2545_v13 = vadd.f32 %v2544_v12, %v2543_v9  ;;  %v2656_v15 = vpop.f32.mrb[119].mxu0 }
 0x34f   : > { %v1432_v16 = vsub.f32 %v2542_v8, %v2654_v10  ;;  %v2657_v17 = vadd.f32 %v2656_v15, %v2655_v11  ;;  %1742 = vmatmul.mubr.bf16.gmra.mrb[112].mxu1 %v1489_v14 }
 0x350   : > { %1751 = vmatprep.mubr.bf16.mxu1 %v3408_v0 }
 0x351   : > { %v1433_v18 = vsub.f32 %v2545_v13, %v2657_v17  ;;  %v1471_v20 = vadd.f32 %v3875_v5, %v1432_v16 }
 0x352   : > { %v2546_v19 = vpop.f32.mrb[56].mxu1 }
 0x353   : > { %v1472_v21 = vadd.f32 %v3875_v5, %v1433_v18  ;;  %v2658_v22 = vpop.f32.mrb[120].mxu0  ;;  %v2547_v23 = vpop.f32.mrb[57].mxu1 }
 0x354   : > { %v2548_v24 = vadd.f32 %v2547_v23, %v2546_v19  ;;  %v2659_v25 = vpop.f32.mrb[121].mxu0  ;;  %v2549_v26 = vpop.f32.mrb[58].mxu1 }
 0x355   : > { %v2660_v27 = vadd.f32 %v2659_v25, %v2658_v22  ;;  %v2661_v28 = vpop.f32.mrb[122].mxu0  ;;  %v2550_v29 = vpop.f32.mrb[59].mxu1  ;;  %v1490_v30 = vpack.c.bf16 %v1472_v21, %v1471_v20 }
 0x356   : > { %v2551_v31 = vadd.f32 %v2550_v29, %v2549_v26  ;;  %v2662_v32 = vpop.f32.mrb[123].mxu0 }
 0x357   : > { %v1434_v33 = vsub.f32 %v2548_v24, %v2660_v27  ;;  %v2663_v34 = vadd.f32 %v2662_v32, %v2661_v28  ;;  %1752 = vmatmul.mubr.bf16.gmra.mrb[116].mxu1 %v1490_v30 }
 0x358   : > { %1761 = vmatprep.mubr.bf16.mxu1 %v3408_v0 }
 0x359   : > { %v1435_v35 = vsub.f32 %v2551_v31, %v2663_v34  ;;  %v1473_v37 = vadd.f32 %v3875_v5, %v1434_v33 }
 0x35a   : > { %v2552_v36 = vpop.f32.mrb[60].mxu1 }
 0x35b   : > { %v1474_v38 = vadd.f32 %v3875_v5, %v1435_v35  ;;  %v2664_v39 = vpop.f32.mrb[124].mxu0  ;;  %v2553_v40 = vpop.f32.mrb[61].mxu1 }
 0x35c   : > { %v2554_v42 = vadd.f32 %v2553_v40, %v2552_v36  ;;  %v2665_v41 = vpop.f32.mrb[125].mxu0  ;;  %v2555_v43 = vpop.f32.mrb[62].mxu1 }
 0x35d   : > { %v2666_v51 = vadd.f32 %v2665_v41, %v2664_v39  ;;  %v2667_v55 = vpop.f32.mrb[126].mxu0  ;;  %v2556_v56 = vpop.f32.mrb[63].mxu1  ;;  %v1491_v57 = vpack.c.bf16 %v1474_v38, %v1473_v37 }
 0x35e   : > { %v2557_v58 = vadd.f32 %v2556_v56, %v2555_v43  ;;  %v2668_v59 = vpop.f32.mrb[127].mxu0 }
 0x35f   : > { %v1436_v60 = vsub.f32 %v2554_v42, %v2666_v51  ;;  %v2669_v61 = vadd.f32 %v2668_v59, %v2667_v55  ;;  %1762 = vmatmul.mubr.bf16.gmra.mrb[120].mxu1 %v1491_v57 }
 0x360   : > { %1771 = vmatprep.mubr.bf16.mxu1 %v3408_v0 }
 0x361   : > { %v1437_v62 = vsub.f32 %v2557_v58, %v2669_v61  ;;  %v1475_v63 = vadd.f32 %v3875_v5, %v1436_v60 }
 0x363   : > { %v1476_v1 = vadd.f32 %v3875_v5, %v1437_v62 }
 0x365   : > { %v1492_v3 = vpack.c.bf16 %v1476_v1, %v1475_v63 }
 0x367   : > { %1772 = vmatmul.mubr.bf16.gmra.mrb[124].mxu1 %v1492_v3 }
 0x368   : > { %2007 = vmatprep.mubr.bf16.mxu1 %v3130_v4 }
 0x3c2   : > { %v1623_v6 = vpop.f32.mrb[64].mxu1 }
 0x3c3   : > { %v1625_v2 = vpop.f32.mrb[65].mxu1 }
 0x3c4   : > { %v1627_v8 = vpop.f32.mrb[66].mxu1 }
 0x3c5   : > { %v1782_v7 = vpack.c.bf16 %v1627_v8, %v1623_v6  ;;  %v1629_v9 = vpop.f32.mrb[67].mxu1 }
 0x3c6   : > { %v1959_v10 = vpack.c.bf16 %v1629_v9, %v1625_v2 }
 0x3ca   : > { %v1633_v11 = vpop.f32.mrb[68].mxu1 }
 0x3cb   : > { %v1635_v12 = vpop.f32.mrb[69].mxu1 }
 0x3cc   : > { %v1637_v14 = vpop.f32.mrb[70].mxu1 }
 0x3cd   : > { %v1783_v13 = vpack.c.bf16 %v1637_v14, %v1633_v11  ;;  %v1639_v0 = vpop.f32.mrb[71].mxu1 }
 0x3ce   : > { %v1960_v15 = vpack.c.bf16 %v1639_v0, %v1635_v12 }
 0x3d2   : > { %v3924_v16 = vpop.f32.mrb[72].mxu1 }
 0x3d3   : > { %v3926_v17 = vpop.f32.mrb[73].mxu1 }
 0x3d4   : > { %v1647_v5 = vpop.f32.mrb[74].mxu1 }
 0x3d5   : > { %v1784_v18 = vpack.c.bf16 %v1647_v5, %v3924_v16  ;;  %v1649_v19 = vpop.f32.mrb[75].mxu1 }
 0x3d6   : > { %v1961_v20 = vpack.c.bf16 %v1649_v19, %v3926_v17 }
 0x3da   : > { %v3930_v21 = vpop.f32.mrb[76].mxu1 }
 0x3db   : > { %v3932_v22 = vpop.f32.mrb[77].mxu1 }
 0x3dc   : > { %v3934_v23 = vpop.f32.mrb[78].mxu1 }
 0x3dd   : > { %v1785_v24 = vpack.c.bf16 %v3934_v23, %v3930_v21  ;;  %v3938_v25 = vpop.f32.mrb[79].mxu1 }
 0x3de   : > { %v1962_v26 = vpack.c.bf16 %v3938_v25, %v3932_v22 }
 0x3e2   : > { %v3942_v27 = vpop.f32.mrb[80].mxu1 }
 0x3e3   : > { %v3944_v28 = vpop.f32.mrb[81].mxu1 }
 0x3e4   : > { %v3946_v29 = vpop.f32.mrb[82].mxu1 }
 0x3e5   : > { %v1786_v30 = vpack.c.bf16 %v3946_v29, %v3942_v27  ;;  %v3950_v31 = vpop.f32.mrb[83].mxu1 }
 0x3e6   : > { %v1963_v32 = vpack.c.bf16 %v3950_v31, %v3944_v28 }
 0x3ea   : > { %v3954_v33 = vpop.f32.mrb[84].mxu1 }
 0x3eb   : > { %v3956_v34 = vpop.f32.mrb[85].mxu1 }
 0x3ec   : > { %v3958_v35 = vpop.f32.mrb[86].mxu1 }
 0x3ed   : > { %v1787_v36 = vpack.c.bf16 %v3958_v35, %v3954_v33  ;;  %v3962_v37 = vpop.f32.mrb[87].mxu1 }
 0x3ee   : > { %v1964_v38 = vpack.c.bf16 %v3962_v37, %v3956_v34 }
 0x3f2   : > { %v3966_v39 = vpop.f32.mrb[88].mxu1 }
 0x3f3   : > { %v3968_v40 = vpop.f32.mrb[89].mxu1 }
 0x3f4   : > { %v3970_v42 = vpop.f32.mrb[90].mxu1 }
 0x3f5   : > { %v1788_v41 = vpack.c.bf16 %v3970_v42, %v3966_v39  ;;  %v3974_v43 = vpop.f32.mrb[91].mxu1  ;;  %v3131_v39 = vld [vmem:[#allocation7] ss:$8 sps:$4 sm:$0xff]   ;;  %v3133_v42 = vld [vmem:[#allocation7 + $0x14] ss:$8 sps:$4 sm:$0xff]  }
 0x3f6   : > { %v1965_v51 = vpack.c.bf16 %v3974_v43, %v3968_v40  ;;  %v3132_v40 = vld [vmem:[#allocation8] ss:$8 sps:$4 sm:$0xff]   ;;  %v3135_v43 = vld [vmem:[#allocation7 + $0x10] ss:$8 sps:$4 sm:$0xff]  }
 0x3fa   : > { %v3978_v55 = vpop.f32.mrb[92].mxu1 }
 0x3fb   : > { %v3980_v56 = vpop.f32.mrb[93].mxu1 }
 0x3fc   : > { %v3982_v57 = vpop.f32.mrb[94].mxu1 }
 0x3fd   : > { %v1789_v58 = vpack.c.bf16 %v3982_v57, %v3978_v55  ;;  %v3986_v59 = vpop.f32.mrb[95].mxu1  ;;  %v3138_v55 = vld [vmem:[#allocation8 + $0x24] ss:$8 sps:$4 sm:$0xff]   ;;  %v3139_v57 = vld [vmem:[#allocation7 + $0x20] ss:$8 sps:$4 sm:$0xff]  }
 0x3fe   : > { %v1966_v60 = vpack.c.bf16 %v3986_v59, %v3980_v56  ;;  %v3140_v56 = vld [vmem:[#allocation8 + $0x20] ss:$8 sps:$4 sm:$0xff]   ;;  %v3142_v59 = vld [vmem:[#allocation8 + $0x34] ss:$8 sps:$4 sm:$0xff]  }
 0x402   : > { %v1703_v61 = vpop.f32.mrb[96].mxu1 }
 0x403   : > { %v1705_v62 = vpop.f32.mrb[97].mxu1 }
 0x404   : > { %v1707_v63 = vpop.f32.mrb[98].mxu1 }
 0x405   : > { %v1790_v1 = vpack.c.bf16 %v1707_v63, %v1703_v61  ;;  %v1709_v3 = vpop.f32.mrb[99].mxu1 }
 0x406   : > { %v1967_v4 = vpack.c.bf16 %v1709_v3, %v1705_v62 }
 0x407   : > { %2670 = vmatprep.subr.bf16.mxu0 %v1790_v1 }
 0x408   : > { %2671 = vmatpush3.bf16.msra.mxu0 %v1782_v7  ;;  %2782 = vmatprep.subr.bf16.mxu1 %v1967_v4 }
 0x409   : > { %2783 = vmatpush3.bf16.msra.mxu1 %v1959_v10 }
 0x40a   : > { %v1713_v6 = vpop.f32.mrb[100].mxu1 }
 0x40b   : > { %v1715_v2 = vpop.f32.mrb[101].mxu1 }
 0x40c   : > { %v1717_v8 = vpop.f32.mrb[102].mxu1 }
 0x40d   : > { %v1791_v9 = vpack.c.bf16 %v1717_v8, %v1713_v6  ;;  %v1719_v11 = vpop.f32.mrb[103].mxu1  ;;  %v3137_v6 = vld [vmem:[#allocation7 + $0x24] ss:$8 sps:$4 sm:$0xff]  }
 0x40e   : > { %v1968_v12 = vpack.c.bf16 %v1719_v11, %v1715_v2  ;;  %v3144_v2 = vld [vmem:[#allocation8 + $0x30] ss:$8 sps:$4 sm:$0xff]   ;;  %v3145_v8 = vld [vmem:[#allocation7 + $0x44] ss:$8 sps:$4 sm:$0xff]   ;;  %v3147_v11 = vld [vmem:[#allocation7 + $0x40] ss:$8 sps:$4 sm:$0xff]  }
 0x40f   : > { %2672 = vmatprep.subr.bf16.mxu0 %v1791_v9  ;;  %v3146_v9 = vld [vmem:[#allocation8 + $0x44] ss:$8 sps:$4 sm:$0xff]  }
 0x410   : > { %2673 = vmatpush3.bf16.msra.mxu0 %v1783_v13  ;;  %2784 = vmatprep.subr.bf16.mxu1 %v1968_v12  ;;  %v3148_v12 = vld [vmem:[#allocation8 + $0x40] ss:$8 sps:$4 sm:$0xff]  }
 0x411   : > { %2785 = vmatpush3.bf16.msra.mxu1 %v1960_v15 }
 0x412   : > { %v1723_v14 = vpop.f32.mrb[104].mxu1 }
 0x413   : > { %v1725_v0 = vpop.f32.mrb[105].mxu1 }
 0x414   : > { %v1727_v16 = vpop.f32.mrb[106].mxu1 }
 0x415   : > { %v1792_v17 = vpack.c.bf16 %v1727_v16, %v1723_v14  ;;  %v1729_v5 = vpop.f32.mrb[107].mxu1  ;;  %v3149_v14 = vld [vmem:[#allocation7 + $0x54] ss:$8 sps:$4 sm:$0xff]   ;;  %v3151_v16 = vld [vmem:[#allocation7 + $0x50] ss:$8 sps:$4 sm:$0xff]  }
 0x416   : > { %v1969_v19 = vpack.c.bf16 %v1729_v5, %v1725_v0  ;;  %v3150_v0 = vld [vmem:[#allocation8 + $0x54] ss:$8 sps:$4 sm:$0xff]   ;;  %v3153_v5 = vld [vmem:[#allocation7 + $0x64] ss:$8 sps:$4 sm:$0xff]  }
 0x417   : > { %2674 = vmatprep.subr.bf16.mxu0 %v1792_v17  ;;  %v3152_v17 = vld [vmem:[#allocation8 + $0x50] ss:$8 sps:$4 sm:$0xff]  }
 0x418   : > { %2675 = vmatpush3.bf16.msra.mxu0 %v1784_v18  ;;  %2786 = vmatprep.subr.bf16.mxu1 %v1969_v19  ;;  %v3154_v19 = vld [vmem:[#allocation8 + $0x64] ss:$8 sps:$4 sm:$0xff]  }
 0x419   : > { %2787 = vmatpush3.bf16.msra.mxu1 %v1961_v20 }
 0x41a   : > { %v1733_v7 = vpop.f32.mrb[108].mxu1 }
 0x41b   : > { %v1735_v10 = vpop.f32.mrb[109].mxu1 }
 0x41c   : > { %v1737_v61 = vpop.f32.mrb[110].mxu1 }
 0x41d   : > { %v1793_v62 = vpack.c.bf16 %v1737_v61, %v1733_v7  ;;  %v1739_v63 = vpop.f32.mrb[111].mxu1  ;;  %v3155_v7 = vld [vmem:[#allocation7 + $0x60] ss:$8 sps:$4 sm:$0xff]   ;;  %v3157_v61 = vld [vmem:[#allocation7 + $0x74] ss:$8 sps:$4 sm:$0xff]  }
 0x41e   : > { %v1970_v1 = vpack.c.bf16 %v1739_v63, %v1735_v10  ;;  %v3156_v10 = vld [vmem:[#allocation8 + $0x60] ss:$8 sps:$4 sm:$0xff]   ;;  %v3159_v63 = vld [vmem:[#allocation7 + $0x70] ss:$8 sps:$4 sm:$0xff]  }
 0x41f   : > { %2676 = vmatprep.subr.bf16.mxu0 %v1793_v62  ;;  %v3158_v62 = vld [vmem:[#allocation8 + $0x74] ss:$8 sps:$4 sm:$0xff]  }
 0x420   : > { %2677 = vmatpush3.bf16.msra.mxu0 %v1785_v24  ;;  %2788 = vmatprep.subr.bf16.mxu1 %v1970_v1  ;;  %v3160_v1 = vld [vmem:[#allocation8 + $0x70] ss:$8 sps:$4 sm:$0xff]  }
 0x421   : > { %2789 = vmatpush3.bf16.msra.mxu1 %v1962_v26 }
 0x422   : > { %v1743_v13 = vpop.f32.mrb[112].mxu1 }
 0x423   : > { %v1745_v15 = vpop.f32.mrb[113].mxu1 }
 0x424   : > { %v1747_v18 = vpop.f32.mrb[114].mxu1 }
 0x425   : > { %v1794_v20 = vpack.c.bf16 %v1747_v18, %v1743_v13  ;;  %v1749_v3 = vpop.f32.mrb[115].mxu1  ;;  %v3161_v13 = vld [vmem:[#allocation7 + $0x84] ss:$8 sps:$4 sm:$0xff]   ;;  %v3163_v18 = vld [vmem:[#allocation7 + $0x80] ss:$8 sps:$4 sm:$0xff]  }
 0x426   : > { %v1971_v4 = vpack.c.bf16 %v1749_v3, %v1745_v15  ;;  %v3162_v15 = vld [vmem:[#allocation8 + $0x84] ss:$8 sps:$4 sm:$0xff]   ;;  %v3165_v3 = vld [vmem:[#allocation7 + $0x94] ss:$8 sps:$4 sm:$0xff]  }
 0x427   : > { %2678 = vmatprep.subr.bf16.mxu0 %v1794_v20  ;;  %v3164_v20 = vld [vmem:[#allocation8 + $0x80] ss:$8 sps:$4 sm:$0xff]  }
 0x428   : > { %2679 = vmatpush3.bf16.msra.mxu0 %v1786_v30  ;;  %2790 = vmatprep.subr.bf16.mxu1 %v1971_v4  ;;  %v3166_v4 = vld [vmem:[#allocation8 + $0x94] ss:$8 sps:$4 sm:$0xff]  }
 0x429   : > { %2791 = vmatpush3.bf16.msra.mxu1 %v1963_v32 }
 0x42a   : > { %v1753_v21 = vpop.f32.mrb[116].mxu1 }
 0x42b   : > { %v1755_v23 = vpop.f32.mrb[117].mxu1 }
 0x42c   : > { %v1757_v22 = vpop.f32.mrb[118].mxu1 }
 0x42d   : > { %v1795_v24 = vpack.c.bf16 %v1757_v22, %v1753_v21  ;;  %v1759_v25 = vpop.f32.mrb[119].mxu1  ;;  %v3167_v21 = vld [vmem:[#allocation7 + $0x90] ss:$8 sps:$4 sm:$0xff]   ;;  %v3169_v22 = vld [vmem:[#allocation7 + $0xa4] ss:$8 sps:$4 sm:$0xff]  }
 0x42e   : > { %v1972_v26 = vpack.c.bf16 %v1759_v25, %v1755_v23  ;;  %v3168_v23 = vld [vmem:[#allocation8 + $0x90] ss:$8 sps:$4 sm:$0xff]   ;;  %v3171_v25 = vld [vmem:[#allocation7 + $0xa0] ss:$8 sps:$4 sm:$0xff]  }
 0x42f   : > { %2680 = vmatprep.subr.bf16.mxu0 %v1795_v24  ;;  %v3170_v24 = vld [vmem:[#allocation8 + $0xa4] ss:$8 sps:$4 sm:$0xff]  }
 0x430   : > { %2681 = vmatpush3.bf16.msra.mxu0 %v1787_v36  ;;  %2792 = vmatprep.subr.bf16.mxu1 %v1972_v26  ;;  %v3172_v26 = vld [vmem:[#allocation8 + $0xa0] ss:$8 sps:$4 sm:$0xff]  }
 0x431   : > { %2793 = vmatpush3.bf16.msra.mxu1 %v1964_v38 }
 0x432   : > { %v1763_v27 = vpop.f32.mrb[120].mxu1 }
 0x433   : > { %v1765_v29 = vpop.f32.mrb[121].mxu1 }
 0x434   : > { %v1767_v28 = vpop.f32.mrb[122].mxu1 }
 0x435   : > { %v1796_v30 = vpack.c.bf16 %v1767_v28, %v1763_v27  ;;  %v1769_v31 = vpop.f32.mrb[123].mxu1  ;;  %v3173_v27 = vld [vmem:[#allocation7 + $0xb4] ss:$8 sps:$4 sm:$0xff]   ;;  %v3175_v28 = vld [vmem:[#allocation7 + $0xb0] ss:$8 sps:$4 sm:$0xff]  }
 0x436   : > { %v1973_v32 = vpack.c.bf16 %v1769_v31, %v1765_v29  ;;  %v3174_v29 = vld [vmem:[#allocation8 + $0xb4] ss:$8 sps:$4 sm:$0xff]   ;;  %v3177_v31 = vld [vmem:[#allocation7 + $0xc4] ss:$8 sps:$4 sm:$0xff]  }
 0x437   : > { %2682 = vmatprep.subr.bf16.mxu0 %v1796_v30  ;;  %v3176_v30 = vld [vmem:[#allocation8 + $0xb0] ss:$8 sps:$4 sm:$0xff]  }
 0x438   : > { %2683 = vmatpush3.bf16.msra.mxu0 %v1788_v41  ;;  %2794 = vmatprep.subr.bf16.mxu1 %v1973_v32  ;;  %v3134_v41 = vld [vmem:[#allocation8 + $0x14] ss:$8 sps:$4 sm:$0xff]   ;;  %v3178_v32 = vld [vmem:[#allocation8 + $0xc4] ss:$8 sps:$4 sm:$0xff]  }
 0x439   : > { %2795 = vmatpush3.bf16.msra.mxu1 %v1965_v51  ;;  %v3136_v51 = vld [vmem:[#allocation8 + $0x10] ss:$8 sps:$4 sm:$0xff]  }
 0x43a   : > { %v1773_v33 = vpop.f32.mrb[124].mxu1 }
 0x43b   : > { %v1775_v35 = vpop.f32.mrb[125].mxu1 }
 0x43c   : > { %v1777_v34 = vpop.f32.mrb[126].mxu1 }
 0x43d   : > { %v1797_v36 = vpack.c.bf16 %v1777_v34, %v1773_v33  ;;  %v1779_v37 = vpop.f32.mrb[127].mxu1  ;;  %v3179_v33 = vld [vmem:[#allocation7 + $0xc0] ss:$8 sps:$4 sm:$0xff]   ;;  %v3181_v34 = vld [vmem:[#allocation7 + $0xd4] ss:$8 sps:$4 sm:$0xff]  }
 0x43e   : > { %v1974_v38 = vpack.c.bf16 %v1779_v37, %v1775_v35  ;;  %v3180_v35 = vld [vmem:[#allocation8 + $0xc0] ss:$8 sps:$4 sm:$0xff]  }
 0x43f   : > { %2684 = vmatprep.subr.bf16.mxu0 %v1797_v36  ;;  %v3182_v36 = vld [vmem:[#allocation8 + $0xd4] ss:$8 sps:$4 sm:$0xff]  }
 0x440   : > { %2685 = vmatpush3.bf16.msra.mxu0 %v1789_v58  ;;  %2796 = vmatprep.subr.bf16.mxu1 %v1974_v38  ;;  %v3141_v58 = vld [vmem:[#allocation7 + $0x34] ss:$8 sps:$4 sm:$0xff]  }
 0x441   : > { %2797 = vmatpush3.bf16.msra.mxu1 %v1966_v60  ;;  %v3143_v60 = vld [vmem:[#allocation7 + $0x30] ss:$8 sps:$4 sm:$0xff]  }
 0x443   : > { %1831 = vmatmul.mubr.bf16.vlgmr.msra.gmra.mrb[128].mxu0 %v3131_v39 }
 0x444   : > { %2008 = vmatmul.mubr.bf16.vlgmr.msra.gmra.mrb[128].mxu1 %v3132_v40  ;;  %1838 = vmatprep.mubr.bf16.mxu0 %v3133_v42 }
 0x445   : > { %2015 = vmatprep.mubr.bf16.mxu1 %v3134_v41 }
 0x44b   : > { %1839 = vmatmul.mubr.bf16.gmra.mrb[132].mxu0 %v3135_v43 }
 0x44c   : > { %2016 = vmatmul.mubr.bf16.gmra.mrb[132].mxu1 %v3136_v51  ;;  %1846 = vmatprep.mubr.bf16.mxu0 %v3137_v6 }
 0x44d   : > { %2023 = vmatprep.mubr.bf16.mxu1 %v3138_v55 }
 0x453   : > { %1847 = vmatmul.mubr.bf16.gmra.mrb[136].mxu0 %v3139_v57 }
 0x454   : > { %2024 = vmatmul.mubr.bf16.gmra.mrb[136].mxu1 %v3140_v56  ;;  %1854 = vmatprep.mubr.bf16.mxu0 %v3141_v58 }
 0x455   : > { %2031 = vmatprep.mubr.bf16.mxu1 %v3142_v59 }
 0x45b   : > { %1855 = vmatmul.mubr.bf16.gmra.mrb[140].mxu0 %v3143_v60 }
 0x45c   : > { %2032 = vmatmul.mubr.bf16.gmra.mrb[140].mxu1 %v3144_v2  ;;  %1862 = vmatprep.mubr.bf16.mxu0 %v3145_v8 }
 0x45d   : > { %2039 = vmatprep.mubr.bf16.mxu1 %v3146_v9 }
 0x463   : > { %1863 = vmatmul.mubr.bf16.gmra.mrb[144].mxu0 %v3147_v11 }
 0x464   : > { %2040 = vmatmul.mubr.bf16.gmra.mrb[144].mxu1 %v3148_v12  ;;  %1870 = vmatprep.mubr.bf16.mxu0 %v3149_v14 }
 0x465   : > { %2047 = vmatprep.mubr.bf16.mxu1 %v3150_v0 }
 0x46b   : > { %1871 = vmatmul.mubr.bf16.gmra.mrb[148].mxu0 %v3151_v16 }
 0x46c   : > { %2048 = vmatmul.mubr.bf16.gmra.mrb[148].mxu1 %v3152_v17  ;;  %1878 = vmatprep.mubr.bf16.mxu0 %v3153_v5 }
 0x46d   : > { %2055 = vmatprep.mubr.bf16.mxu1 %v3154_v19 }
 0x473   : > { %1879 = vmatmul.mubr.bf16.gmra.mrb[152].mxu0 %v3155_v7 }
 0x474   : > { %2056 = vmatmul.mubr.bf16.gmra.mrb[152].mxu1 %v3156_v10  ;;  %1886 = vmatprep.mubr.bf16.mxu0 %v3157_v61 }
 0x475   : > { %2063 = vmatprep.mubr.bf16.mxu1 %v3158_v62 }
 0x47b   : > { %1887 = vmatmul.mubr.bf16.gmra.mrb[156].mxu0 %v3159_v63 }
 0x47c   : > { %2064 = vmatmul.mubr.bf16.gmra.mrb[156].mxu1 %v3160_v1  ;;  %1894 = vmatprep.mubr.bf16.mxu0 %v3161_v13 }
 0x47d   : > { %2071 = vmatprep.mubr.bf16.mxu1 %v3162_v15 }
 0x483   : > { %1895 = vmatmul.mubr.bf16.gmra.mrb[160].mxu0 %v3163_v18 }
 0x484   : > { %2072 = vmatmul.mubr.bf16.gmra.mrb[160].mxu1 %v3164_v20  ;;  %1902 = vmatprep.mubr.bf16.mxu0 %v3165_v3 }
 0x485   : > { %2079 = vmatprep.mubr.bf16.mxu1 %v3166_v4 }
 0x48b   : > { %1903 = vmatmul.mubr.bf16.gmra.mrb[164].mxu0 %v3167_v21 }
 0x48c   : > { %2080 = vmatmul.mubr.bf16.gmra.mrb[164].mxu1 %v3168_v23  ;;  %1910 = vmatprep.mubr.bf16.mxu0 %v3169_v22 }
 0x48d   : > { %2087 = vmatprep.mubr.bf16.mxu1 %v3170_v24 }
 0x493   : > { %1911 = vmatmul.mubr.bf16.gmra.mrb[168].mxu0 %v3171_v25 }
 0x494   : > { %2088 = vmatmul.mubr.bf16.gmra.mrb[168].mxu1 %v3172_v26  ;;  %1918 = vmatprep.mubr.bf16.mxu0 %v3173_v27 }
 0x495   : > { %2095 = vmatprep.mubr.bf16.mxu1 %v3174_v29 }
 0x49b   : > { %1919 = vmatmul.mubr.bf16.gmra.mrb[172].mxu0 %v3175_v28 }
 0x49c   : > { %2096 = vmatmul.mubr.bf16.gmra.mrb[172].mxu1 %v3176_v30  ;;  %1926 = vmatprep.mubr.bf16.mxu0 %v3177_v31 }
 0x49d   : > { %2103 = vmatprep.mubr.bf16.mxu1 %v3178_v32 }
 0x4a3   : > { %1927 = vmatmul.mubr.bf16.gmra.mrb[176].mxu0 %v3179_v33 }
 0x4a4   : > { %2104 = vmatmul.mubr.bf16.gmra.mrb[176].mxu1 %v3180_v35  ;;  %1934 = vmatprep.mubr.bf16.mxu0 %v3181_v34 }
 0x4a5   : > { %2111 = vmatprep.mubr.bf16.mxu1 %v3182_v36 }
 0x4ab   : > { %1935 = vmatmul.mubr.bf16.gmra.mrb[180].mxu0 %v3840_v44 }
 0x4ac   : > { %2112 = vmatmul.mubr.bf16.gmra.mrb[180].mxu1 %v3842_v45  ;;  %1942 = vmatprep.mubr.bf16.mxu0 %v3844_v46 }
 0x4ad   : > { %2119 = vmatprep.mubr.bf16.mxu1 %v3846_v48 }
 0x4b3   : > { %1943 = vmatmul.mubr.bf16.gmra.mrb[184].mxu0 %v3852_v49 }
 0x4b4   : > { %2120 = vmatmul.mubr.bf16.gmra.mrb[184].mxu1 %v3854_v52  ;;  %1950 = vmatprep.mubr.bf16.mxu0 %v3856_v53 }
 0x4b5   : > { %2127 = vmatprep.mubr.bf16.mxu1 %v3858_v54 }
 0x4bb   : > { %1951 = vmatmul.mubr.bf16.gmra.mrb[188].mxu0 %v3864_v47 }
 0x4bc   : > { %2128 = vmatmul.mubr.bf16.gmra.mrb[188].mxu1 %v3866_v50 }
 0x516   : > { %v2686_v44 = vpop.f32.mrb[128].mxu0 }
 0x517   : > { %v2798_v37 = vpop.f32.mrb[128].mxu1  ;;  %v2687_v45 = vpop.f32.mrb[129].mxu0 }
 0x518   : > { %v2688_v38 = vadd.f32 %v2687_v45, %v2686_v44  ;;  %v2799_v46 = vpop.f32.mrb[129].mxu1  ;;  %v2689_v39 = vpop.f32.mrb[130].mxu0 }
 0x519   : > { %v2800_v48 = vadd.f32 %v2799_v46, %v2798_v37  ;;  %v2801_v40 = vpop.f32.mrb[130].mxu1  ;;  %v2690_v49 = vpop.f32.mrb[131].mxu0 }
 0x51a   : > { %v2691_v42 = vadd.f32 %v2690_v49, %v2689_v39  ;;  %v2802_v52 = vpop.f32.mrb[131].mxu1 }
 0x51b   : > { %v2136_v41 = vsub.f32 %v2688_v38, %v2800_v48  ;;  %v2803_v53 = vadd.f32 %v2802_v52, %v2801_v40 }
 0x51d   : > { %2168 = vst [vmem:[%s4032_s30] sm:$0xff] %v2136_v41  ;;  %v2137_v54 = vsub.f32 %v2691_v42, %v2803_v53 }
 0x51e   : > { %v2692_v47 = vpop.f32.mrb[132].mxu0 }
 0x51f   : > { %2169 = vst [vmem:[%s4032_s30 + $0x8] sm:$0xff] %v2137_v54  ;;  %v2804_v50 = vpop.f32.mrb[132].mxu1  ;;  %v2693_v43 = vpop.f32.mrb[133].mxu0 }
 0x520   : > { %v2694_v51 = vadd.f32 %v2693_v43, %v2692_v47  ;;  %v2805_v6 = vpop.f32.mrb[133].mxu1  ;;  %v2695_v55 = vpop.f32.mrb[134].mxu0 }
 0x521   : > { %v2806_v57 = vadd.f32 %v2805_v6, %v2804_v50  ;;  %v2807_v56 = vpop.f32.mrb[134].mxu1  ;;  %v2696_v58 = vpop.f32.mrb[135].mxu0 }
 0x522   : > { %v2697_v59 = vadd.f32 %v2696_v58, %v2695_v55  ;;  %v2808_v60 = vpop.f32.mrb[135].mxu1 }
 0x523   : > { %v2138_v2 = vsub.f32 %v2694_v51, %v2806_v57  ;;  %v2809_v8 = vadd.f32 %v2808_v60, %v2807_v56 }
 0x525   : > { %2170 = vst [vmem:[%s4032_s30 + $0x10] sm:$0xff] %v2138_v2  ;;  %v2139_v9 = vsub.f32 %v2697_v59, %v2809_v8 }
 0x526   : > { %v2698_v11 = vpop.f32.mrb[136].mxu0 }
 0x527   : > { %2171 = vst [vmem:[%s4032_s30 + $0x18] sm:$0xff] %v2139_v9  ;;  %v2810_v12 = vpop.f32.mrb[136].mxu1  ;;  %v2699_v14 = vpop.f32.mrb[137].mxu0 }
 0x528   : > { %v2700_v0 = vadd.f32 %v2699_v14, %v2698_v11  ;;  %v2811_v16 = vpop.f32.mrb[137].mxu1  ;;  %v2701_v17 = vpop.f32.mrb[138].mxu0 }
 0x529   : > { %v2812_v5 = vadd.f32 %v2811_v16, %v2810_v12  ;;  %v2813_v19 = vpop.f32.mrb[138].mxu1  ;;  %v2702_v7 = vpop.f32.mrb[139].mxu0 }
 0x52a   : > { %v2703_v10 = vadd.f32 %v2702_v7, %v2701_v17  ;;  %v2814_v61 = vpop.f32.mrb[139].mxu1 }
 0x52b   : > { %v2140_v62 = vsub.f32 %v2700_v0, %v2812_v5  ;;  %v2815_v63 = vadd.f32 %v2814_v61, %v2813_v19 }
 0x52d   : > { %2172 = vst [vmem:[%s4032_s30 + $0x20] sm:$0xff] %v2140_v62  ;;  %v2141_v1 = vsub.f32 %v2703_v10, %v2815_v63 }
 0x52e   : > { %v2704_v13 = vpop.f32.mrb[140].mxu0 }
 0x52f   : > { %2173 = vst [vmem:[%s4032_s30 + $0x28] sm:$0xff] %v2141_v1  ;;  %v2816_v15 = vpop.f32.mrb[140].mxu1  ;;  %v2705_v18 = vpop.f32.mrb[141].mxu0 }
 0x530   : > { %v2706_v20 = vadd.f32 %v2705_v18, %v2704_v13  ;;  %v2817_v3 = vpop.f32.mrb[141].mxu1  ;;  %v2707_v4 = vpop.f32.mrb[142].mxu0 }
 0x531   : > { %v2818_v21 = vadd.f32 %v2817_v3, %v2816_v15  ;;  %v2819_v23 = vpop.f32.mrb[142].mxu1  ;;  %v2708_v22 = vpop.f32.mrb[143].mxu0 }
 0x532   : > { %v2709_v24 = vadd.f32 %v2708_v22, %v2707_v4  ;;  %v2820_v25 = vpop.f32.mrb[143].mxu1 }
 0x533   : > { %v2142_v26 = vsub.f32 %v2706_v20, %v2818_v21  ;;  %v2821_v27 = vadd.f32 %v2820_v25, %v2819_v23 }
 0x535   : > { %2174 = vst [vmem:[%s4032_s30 + $0x30] sm:$0xff] %v2142_v26  ;;  %v2143_v29 = vsub.f32 %v2709_v24, %v2821_v27 }
 0x536   : > { %v2710_v28 = vpop.f32.mrb[144].mxu0 }
 0x537   : > { %2175 = vst [vmem:[%s4032_s30 + $0x38] sm:$0xff] %v2143_v29  ;;  %v2822_v30 = vpop.f32.mrb[144].mxu1  ;;  %v2711_v31 = vpop.f32.mrb[145].mxu0 }
 0x538   : > { %v2712_v32 = vadd.f32 %v2711_v31, %v2710_v28  ;;  %v2823_v33 = vpop.f32.mrb[145].mxu1  ;;  %v2713_v35 = vpop.f32.mrb[146].mxu0 }
 0x539   : > { %v2824_v34 = vadd.f32 %v2823_v33, %v2822_v30  ;;  %v2825_v36 = vpop.f32.mrb[146].mxu1  ;;  %v2714_v44 = vpop.f32.mrb[147].mxu0 }
 0x53a   : > { %v2715_v37 = vadd.f32 %v2714_v44, %v2713_v35  ;;  %v2826_v45 = vpop.f32.mrb[147].mxu1 }
 0x53b   : > { %v2144_v38 = vsub.f32 %v2712_v32, %v2824_v34  ;;  %v2827_v46 = vadd.f32 %v2826_v45, %v2825_v36 }
 0x53d   : > { %2176 = vst [vmem:[%s4032_s30 + $0x40] sm:$0xff] %v2144_v38  ;;  %v2145_v39 = vsub.f32 %v2715_v37, %v2827_v46 }
 0x53e   : > { %v2716_v48 = vpop.f32.mrb[148].mxu0 }
 0x53f   : > { %2177 = vst [vmem:[%s4032_s30 + $0x48] sm:$0xff] %v2145_v39  ;;  %v2828_v40 = vpop.f32.mrb[148].mxu1  ;;  %v2717_v49 = vpop.f32.mrb[149].mxu0 }
 0x540   : > { %v2718_v42 = vadd.f32 %v2717_v49, %v2716_v48  ;;  %v2829_v52 = vpop.f32.mrb[149].mxu1  ;;  %v2719_v41 = vpop.f32.mrb[150].mxu0 }
 0x541   : > { %v2830_v53 = vadd.f32 %v2829_v52, %v2828_v40  ;;  %v2831_v54 = vpop.f32.mrb[150].mxu1  ;;  %v2720_v47 = vpop.f32.mrb[151].mxu0 }
 0x542   : > { %v2721_v50 = vadd.f32 %v2720_v47, %v2719_v41  ;;  %v2832_v43 = vpop.f32.mrb[151].mxu1 }
 0x543   : > { %v2146_v51 = vsub.f32 %v2718_v42, %v2830_v53  ;;  %v2833_v6 = vadd.f32 %v2832_v43, %v2831_v54 }
 0x545   : > { %2178 = vst [vmem:[%s4032_s30 + $0x50] sm:$0xff] %v2146_v51  ;;  %v2147_v55 = vsub.f32 %v2721_v50, %v2833_v6 }
 0x546   : > { %v2722_v57 = vpop.f32.mrb[152].mxu0 }
 0x547   : > { %2179 = vst [vmem:[%s4032_s30 + $0x58] sm:$0xff] %v2147_v55  ;;  %v2834_v56 = vpop.f32.mrb[152].mxu1  ;;  %v2723_v58 = vpop.f32.mrb[153].mxu0 }
 0x548   : > { %v2724_v59 = vadd.f32 %v2723_v58, %v2722_v57  ;;  %v2835_v60 = vpop.f32.mrb[153].mxu1  ;;  %v2725_v2 = vpop.f32.mrb[154].mxu0 }
 0x549   : > { %v2836_v8 = vadd.f32 %v2835_v60, %v2834_v56  ;;  %v2837_v9 = vpop.f32.mrb[154].mxu1  ;;  %v2726_v11 = vpop.f32.mrb[155].mxu0 }
 0x54a   : > { %v2727_v12 = vadd.f32 %v2726_v11, %v2725_v2  ;;  %v2838_v14 = vpop.f32.mrb[155].mxu1 }
 0x54b   : > { %v2148_v0 = vsub.f32 %v2724_v59, %v2836_v8  ;;  %v2839_v16 = vadd.f32 %v2838_v14, %v2837_v9 }
 0x54d   : > { %2180 = vst [vmem:[%s4032_s30 + $0x60] sm:$0xff] %v2148_v0  ;;  %v2149_v17 = vsub.f32 %v2727_v12, %v2839_v16 }
 0x54e   : > { %v2728_v5 = vpop.f32.mrb[156].mxu0 }
 0x54f   : > { %2181 = vst [vmem:[%s4032_s30 + $0x68] sm:$0xff] %v2149_v17  ;;  %v2840_v19 = vpop.f32.mrb[156].mxu1  ;;  %v2729_v7 = vpop.f32.mrb[157].mxu0 }
 0x550   : > { %v2730_v10 = vadd.f32 %v2729_v7, %v2728_v5  ;;  %v2841_v61 = vpop.f32.mrb[157].mxu1  ;;  %v2731_v62 = vpop.f32.mrb[158].mxu0 }
 0x551   : > { %v2842_v63 = vadd.f32 %v2841_v61, %v2840_v19  ;;  %v2843_v1 = vpop.f32.mrb[158].mxu1  ;;  %v2732_v13 = vpop.f32.mrb[159].mxu0 }
 0x552   : > { %v2733_v15 = vadd.f32 %v2732_v13, %v2731_v62  ;;  %v2844_v18 = vpop.f32.mrb[159].mxu1 }
 0x553   : > { %v2150_v20 = vsub.f32 %v2730_v10, %v2842_v63  ;;  %v2845_v3 = vadd.f32 %v2844_v18, %v2843_v1 }
 0x555   : > { %2182 = vst [vmem:[%s4032_s30 + $0x70] sm:$0xff] %v2150_v20  ;;  %v2151_v4 = vsub.f32 %v2733_v15, %v2845_v3 }
 0x556   : > { %v2734_v21 = vpop.f32.mrb[160].mxu0 }
 0x557   : > { %2183 = vst [vmem:[%s4032_s30 + $0x78] sm:$0xff] %v2151_v4  ;;  %v2846_v23 = vpop.f32.mrb[160].mxu1  ;;  %v2735_v22 = vpop.f32.mrb[161].mxu0 }
 0x558   : > { %v2736_v24 = vadd.f32 %v2735_v22, %v2734_v21  ;;  %v2847_v25 = vpop.f32.mrb[161].mxu1  ;;  %v2737_v26 = vpop.f32.mrb[162].mxu0 }
 0x559   : > { %v2848_v27 = vadd.f32 %v2847_v25, %v2846_v23  ;;  %v2849_v29 = vpop.f32.mrb[162].mxu1  ;;  %v2738_v28 = vpop.f32.mrb[163].mxu0 }
 0x55a   : > { %v2739_v30 = vadd.f32 %v2738_v28, %v2737_v26  ;;  %v2850_v31 = vpop.f32.mrb[163].mxu1 }
 0x55b   : > { %v2152_v32 = vsub.f32 %v2736_v24, %v2848_v27  ;;  %v2851_v33 = vadd.f32 %v2850_v31, %v2849_v29 }
 0x55d   : > { %2184 = vst [vmem:[%s4032_s30 + $0x80] sm:$0xff] %v2152_v32  ;;  %v2153_v35 = vsub.f32 %v2739_v30, %v2851_v33 }
 0x55e   : > { %v2740_v34 = vpop.f32.mrb[164].mxu0 }
 0x55f   : > { %2185 = vst [vmem:[%s4032_s30 + $0x88] sm:$0xff] %v2153_v35  ;;  %v2852_v36 = vpop.f32.mrb[164].mxu1  ;;  %v2741_v44 = vpop.f32.mrb[165].mxu0 }
 0x560   : > { %v2742_v37 = vadd.f32 %v2741_v44, %v2740_v34  ;;  %v2853_v45 = vpop.f32.mrb[165].mxu1  ;;  %v2743_v38 = vpop.f32.mrb[166].mxu0 }
 0x561   : > { %v2854_v46 = vadd.f32 %v2853_v45, %v2852_v36  ;;  %v2855_v39 = vpop.f32.mrb[166].mxu1  ;;  %v2744_v48 = vpop.f32.mrb[167].mxu0 }
 0x562   : > { %v2745_v40 = vadd.f32 %v2744_v48, %v2743_v38  ;;  %v2856_v49 = vpop.f32.mrb[167].mxu1 }
 0x563   : > { %v2154_v42 = vsub.f32 %v2742_v37, %v2854_v46  ;;  %v2857_v52 = vadd.f32 %v2856_v49, %v2855_v39 }
 0x565   : > { %2186 = vst [vmem:[%s4032_s30 + $0x90] sm:$0xff] %v2154_v42  ;;  %v2155_v41 = vsub.f32 %v2745_v40, %v2857_v52 }
 0x566   : > { %v2746_v53 = vpop.f32.mrb[168].mxu0 }
 0x567   : > { %2187 = vst [vmem:[%s4032_s30 + $0x98] sm:$0xff] %v2155_v41  ;;  %v2858_v54 = vpop.f32.mrb[168].mxu1  ;;  %v2747_v47 = vpop.f32.mrb[169].mxu0 }
 0x568   : > { %v2748_v50 = vadd.f32 %v2747_v47, %v2746_v53  ;;  %v2859_v43 = vpop.f32.mrb[169].mxu1  ;;  %v2749_v51 = vpop.f32.mrb[170].mxu0 }
 0x569   : > { %v2860_v6 = vadd.f32 %v2859_v43, %v2858_v54  ;;  %v2861_v55 = vpop.f32.mrb[170].mxu1  ;;  %v2750_v57 = vpop.f32.mrb[171].mxu0 }
 0x56a   : > { %v2751_v56 = vadd.f32 %v2750_v57, %v2749_v51  ;;  %v2862_v58 = vpop.f32.mrb[171].mxu1 }
 0x56b   : > { %v2156_v59 = vsub.f32 %v2748_v50, %v2860_v6  ;;  %v2863_v60 = vadd.f32 %v2862_v58, %v2861_v55 }
 0x56d   : > { %2188 = vst [vmem:[%s4032_s30 + $0xa0] sm:$0xff] %v2156_v59  ;;  %v2157_v2 = vsub.f32 %v2751_v56, %v2863_v60 }
 0x56e   : > { %v2752_v8 = vpop.f32.mrb[172].mxu0 }
 0x56f   : > { %2189 = vst [vmem:[%s4032_s30 + $0xa8] sm:$0xff] %v2157_v2  ;;  %v2864_v9 = vpop.f32.mrb[172].mxu1  ;;  %v2753_v11 = vpop.f32.mrb[173].mxu0 }
 0x570   : > { %v2754_v12 = vadd.f32 %v2753_v11, %v2752_v8  ;;  %v2865_v14 = vpop.f32.mrb[173].mxu1  ;;  %v2755_v0 = vpop.f32.mrb[174].mxu0 }
 0x571   : > { %v2866_v16 = vadd.f32 %v2865_v14, %v2864_v9  ;;  %v2867_v17 = vpop.f32.mrb[174].mxu1  ;;  %v2756_v5 = vpop.f32.mrb[175].mxu0 }
 0x572   : > { %v2757_v19 = vadd.f32 %v2756_v5, %v2755_v0  ;;  %v2868_v7 = vpop.f32.mrb[175].mxu1 }
 0x573   : > { %v2158_v10 = vsub.f32 %v2754_v12, %v2866_v16  ;;  %v2869_v61 = vadd.f32 %v2868_v7, %v2867_v17 }
 0x575   : > { %2190 = vst [vmem:[%s4032_s30 + $0xb0] sm:$0xff] %v2158_v10  ;;  %v2159_v62 = vsub.f32 %v2757_v19, %v2869_v61 }
 0x576   : > { %v2758_v63 = vpop.f32.mrb[176].mxu0 }
 0x577   : > { %2191 = vst [vmem:[%s4032_s30 + $0xb8] sm:$0xff] %v2159_v62  ;;  %v2870_v1 = vpop.f32.mrb[176].mxu1  ;;  %v2759_v13 = vpop.f32.mrb[177].mxu0 }
 0x578   : > { %v2760_v15 = vadd.f32 %v2759_v13, %v2758_v63  ;;  %v2871_v18 = vpop.f32.mrb[177].mxu1  ;;  %v2761_v20 = vpop.f32.mrb[178].mxu0 }
 0x579   : > { %v2872_v3 = vadd.f32 %v2871_v18, %v2870_v1  ;;  %v2873_v4 = vpop.f32.mrb[178].mxu1  ;;  %v2762_v21 = vpop.f32.mrb[179].mxu0 }
 0x57a   : > { %v2763_v23 = vadd.f32 %v2762_v21, %v2761_v20  ;;  %v2874_v22 = vpop.f32.mrb[179].mxu1 }
 0x57b   : > { %v2160_v24 = vsub.f32 %v2760_v15, %v2872_v3  ;;  %v2875_v25 = vadd.f32 %v2874_v22, %v2873_v4 }
 0x57d   : > { %2192 = vst [vmem:[%s4032_s30 + $0xc0] sm:$0xff] %v2160_v24  ;;  %v2161_v26 = vsub.f32 %v2763_v23, %v2875_v25 }
 0x57e   : > { %v2764_v27 = vpop.f32.mrb[180].mxu0 }
 0x57f   : > { %2193 = vst [vmem:[%s4032_s30 + $0xc8] sm:$0xff] %v2161_v26  ;;  %v2876_v29 = vpop.f32.mrb[180].mxu1  ;;  %v2765_v28 = vpop.f32.mrb[181].mxu0 }
 0x580   : > { %v2766_v30 = vadd.f32 %v2765_v28, %v2764_v27  ;;  %v2877_v31 = vpop.f32.mrb[181].mxu1  ;;  %v2767_v32 = vpop.f32.mrb[182].mxu0 }
 0x581   : > { %v2878_v33 = vadd.f32 %v2877_v31, %v2876_v29  ;;  %v2879_v35 = vpop.f32.mrb[182].mxu1  ;;  %v2768_v34 = vpop.f32.mrb[183].mxu0 }
 0x582   : > { %v2769_v36 = vadd.f32 %v2768_v34, %v2767_v32  ;;  %v2880_v44 = vpop.f32.mrb[183].mxu1 }
 0x583   : > { %v2162_v37 = vsub.f32 %v2766_v30, %v2878_v33  ;;  %v2881_v45 = vadd.f32 %v2880_v44, %v2879_v35 }
 0x585   : > { %2194 = vst [vmem:[%s4032_s30 + $0xd0] sm:$0xff] %v2162_v37  ;;  %v2163_v38 = vsub.f32 %v2769_v36, %v2881_v45 }
 0x586   : > { %v2770_v46 = vpop.f32.mrb[184].mxu0 }
 0x587   : > { %2195 = vst [vmem:[%s4032_s30 + $0xd8] sm:$0xff] %v2163_v38  ;;  %v2882_v39 = vpop.f32.mrb[184].mxu1  ;;  %v2771_v48 = vpop.f32.mrb[185].mxu0 }
 0x588   : > { %v2772_v40 = vadd.f32 %v2771_v48, %v2770_v46  ;;  %v2883_v49 = vpop.f32.mrb[185].mxu1  ;;  %v2773_v42 = vpop.f32.mrb[186].mxu0 }
 0x589   : > { %v2884_v52 = vadd.f32 %v2883_v49, %v2882_v39  ;;  %v2885_v41 = vpop.f32.mrb[186].mxu1  ;;  %v2774_v53 = vpop.f32.mrb[187].mxu0 }
 0x58a   : > { %v2775_v54 = vadd.f32 %v2774_v53, %v2773_v42  ;;  %v2886_v47 = vpop.f32.mrb[187].mxu1 }
 0x58b   : > { %v2164_v50 = vsub.f32 %v2772_v40, %v2884_v52  ;;  %v2887_v43 = vadd.f32 %v2886_v47, %v2885_v41 }
 0x58d   : > { %2196 = vst [vmem:[%s4032_s30 + $0xe0] sm:$0xff] %v2164_v50  ;;  %v2165_v51 = vsub.f32 %v2775_v54, %v2887_v43 }
 0x58e   : > { %v2776_v6 = vpop.f32.mrb[188].mxu0 }
 0x58f   : > { %2197 = vst [vmem:[%s4032_s30 + $0xe8] sm:$0xff] %v2165_v51  ;;  %v2888_v55 = vpop.f32.mrb[188].mxu1  ;;  %v2777_v57 = vpop.f32.mrb[189].mxu0 }
 0x590   : > { %v2778_v56 = vadd.f32 %v2777_v57, %v2776_v6  ;;  %v2889_v58 = vpop.f32.mrb[189].mxu1  ;;  %v2779_v59 = vpop.f32.mrb[190].mxu0 }
 0x591   : > { %v2890_v60 = vadd.f32 %v2889_v58, %v2888_v55  ;;  %v2891_v2 = vpop.f32.mrb[190].mxu1  ;;  %v2780_v8 = vpop.f32.mrb[191].mxu0 }
 0x592   : > { %v2781_v9 = vadd.f32 %v2780_v8, %v2779_v59  ;;  %v2892_v11 = vpop.f32.mrb[191].mxu1 }
 0x593   : > { %v2166_v12 = vsub.f32 %v2778_v56, %v2890_v60  ;;  %v2893_v14 = vadd.f32 %v2892_v11, %v2891_v2 }
 0x595   : > { %2198 = vst [vmem:[%s4032_s30 + $0xf0] sm:$0xff] %v2166_v12  ;;  %v2167_v0 = vsub.f32 %v2781_v9, %v2893_v14 }
 0x597   : > { %2199 = vst [vmem:[%s4032_s30 + $0xf8] sm:$0xff] %v2167_v0 }
 0x598   : > { %3338 = shalt.err (!%p3335_p13)
}
 0x599   : > { %s3339_s12 = scalar_lea.hbm %s4069_s17, 4096  ;;  %s3343_s29 = scalar_lea.hbm %s4123_s6, 8192 }
 0x59a   : > { %p3340_p9 = scmp.ne.s32.totalorder %s4069_s17, %s3339_s12  ;;  %p3344_p4 = scmp.lt.u32.totalorder %s4069_s17, %s4123_s6 }
 0x59b   : > { %p3345_p8 = scmp.lt.u32.totalorder %s3343_s29, %s3339_s12  ;;  %p3347_p3 = scmp.lt.u32.totalorder %s3339_s12, %s4069_s17 }
 0x59c   : > { %p3341_p0 = pnand %p3340_p9, %p3618_p10 }
 0x59d   : > { %p3346_p6 = por %p3345_p8, %p3344_p4 }
 0x59e   : > { %p3342_p11 = pneg %p3341_p0 }
 0x59f   : > { %p3348_p5 = por %p3347_p3, %p3346_p6 }
 0x5a1   : > { %p3349_p7 = pnand %p3348_p5, %p3342_p11 }
 0x5a3   : > { %3352 = shalt.err (!%p3349_p7)
}
 0x5a4   : > { %s3410_s10 = smov 128   ;;  %s3411_s8 = smov 8  }
 0x5a5   : > { %2912 = dma.vmem_to_hbm [thread:$0]  (%p3618_p10), %s4071_s7, 4096, %s4069_s17, %s2201_s19, %s3410_s10, %s3410_s10, %s3411_s8  }
 0x5a6 PF: > { %s2229_s25 = sand.u32 1, %s3387_s21   ;;  %p4141_p12 = scmp.ne.s32.totalorder %s4128_s28, 0 }
 0x5a7   : > { %p4142_p1 = scmp.ge.s32.totalorder %s3399_s24, 2  ;;  %s2230_s14 = scalar_lea.sflag [#allocation4], %s2229_s25 }
 0x5a9   : > { %p2932_p2 = pnand %p4142_p1, %p4141_p12 }
 0x5ab   : > { %3382 = dma.done.wait (!%p2932_p2), %s2230_s14, 4096  }
 0x5ac   : > { %3384 = vsyncadd (!%p2932_p2), %s2230_s14, 4294963200  ;;  %p21_p13 = scmp.ge.s32.totalorder %s3608_s18, 4   ;;  %s4143_s21 = smov %s3391_s22 }
 0x5ad   : > { %s4144_s22 = smov %s3395_s23  ;;  %s4145_s23 = smov %s3624_s16 }
 0x5ae   : > { %s4146_s24 = smov %s3608_s18  ;;  %23 = sbr.rel (!%p21_p13) target bundleno = 7 (0x7), region = 105 }
 0x5b5   :  { %2235 = vsyncpa [#allocation3], 1 }
 0x5b6   :  { %2237 = vsyncpa [#allocation3 + $0x1], 1 }
 0x5b7   :  { %2238 = vsyncpa [#allocation6], 1 }
 0x5b8   :  { %2239 = vsyncpa [#allocation9], 1 }
 0x5b9   :  { %2240 = vsyncpa [#allocation4], 1 }
 0x5ba   :  { %2242 = vsyncpa [#allocation4 + $0x1], 1 }

</bundles_post_ra>
